<compile_context>
chip_gen: v5e
topology: v5e:2x2
jax: 0.10.0
libtpu: 0.0.40
codegen_flags: <defaults>
</compile_context>

<pallas_src>
import functools

import jax
import jax.numpy as jnp
from jax import lax
from jax.experimental import pallas as pl
from jax.experimental.pallas import tpu as pltpu


def _round_up(x, m):
    return ((x + m - 1) // m) * m


def _make_lstm_kernel(T_total, T_chunk, Hg, unroll, mxu_dtype, needs_mask):
    def kernel(x_ref, wih_ref, whh_ref, b_ref, wfc_ref, bfc_ref,
               out_ref, xg_ref, h_ref, c_ref):
        # x_ref:   (T_chunk*B_shard, I)  time-major flattened chunk (bf16)
        # wih_ref: (I, 4Hg)   W_ih^T, gate-lane padded (bf16)
        # whh_ref: (Hg, 4Hg)  W_hh^T, gate-lane padded (bf16)
        # b_ref:   (1, 4Hg)   b_ih + b_hh, gate-lane padded (f32)
        # wfc_ref: (Hg, O_pad) W_fc^T padded (bf16)
        # bfc_ref: (1, O_pad) (f32)
        # out_ref: (B_shard, O_pad)
        # xg_ref:  (T_chunk, B_shard, 4Hg) scratch (bf16)
        # h_ref/c_ref: (B_shard, Hg) f32 scratch carried across chunks
        chunk = pl.program_id(1)
        num_chunks = pl.num_programs(1)
        Tc, Bs, four_hg = xg_ref.shape

        # One batched MXU matmul for this chunk's input-gate projections.
        proj = jnp.dot(x_ref[...], wih_ref[...],
                       preferred_element_type=jnp.float32) + b_ref[...]
        xg_ref[...] = proj.astype(xg_ref.dtype).reshape(Tc, Bs, four_hg)

        @pl.when(chunk == 0)
        def _():
            h_ref[...] = jnp.zeros_like(h_ref)
            c_ref[...] = jnp.zeros_like(c_ref)

        def step(t, carry):
            h, c = carry
            # Only the recurrent matmul sits on the serial critical path.
            gates = xg_ref[t].astype(jnp.float32) + jnp.dot(
                h.astype(mxu_dtype), whh_ref[...],
                preferred_element_type=jnp.float32)
            # Lane-aligned, full-vreg slices (Hg is a multiple of 128).
            i_g = jax.nn.sigmoid(gates[:, 0 * Hg:1 * Hg])
            f_g = jax.nn.sigmoid(gates[:, 1 * Hg:2 * Hg])
            g_g = jnp.tanh(gates[:, 2 * Hg:3 * Hg])
            o_g = jax.nn.sigmoid(gates[:, 3 * Hg:4 * Hg])
            c_new = f_g * c + i_g * g_g
            h_new = o_g * jnp.tanh(c_new)
            if needs_mask:
                valid = (chunk * T_chunk + t) < T_total
                h_new = jnp.where(valid, h_new, h)
                c_new = jnp.where(valid, c_new, c)
            return (h_new, c_new)

        h_t, c_t = lax.fori_loop(0, Tc, step, (h_ref[...], c_ref[...]),
                                 unroll=max(1, min(unroll, Tc)))
        h_ref[...] = h_t
        c_ref[...] = c_t

        @pl.when(chunk == num_chunks - 1)
        def _():
            out_ref[...] = (
                jnp.dot(h_t.astype(mxu_dtype), wfc_ref[...],
                        preferred_element_type=jnp.float32) + bfc_ref[...]
            ).astype(out_ref.dtype)

    return kernel


def lstm_model_forward(x, params, *, t_chunk=32, unroll=8,
                       mxu_dtype=jnp.bfloat16):
    """x: (B, T, I) float32; returns (B, O) = fc(h_T), matching the nn.Module."""
    B, T, I = x.shape
    H = params["w_hh"].shape[1]
    O = params["w_fc"].shape[0]

    Hg = _round_up(H, 128)            # lane-aligned per-gate width
    O_pad = _round_up(O, 128)         # lane-dense output store

    # Batch padding / sharding. Two batch shards (parallel grid axis) when the
    # padded batch allows it, so v7x's two TensorCores are both used.
    if B <= 8:
        B_pad, n_bshard = 8, 1
    else:
        B_pad, n_bshard = _round_up(B, 16), 2
    B_shard = B_pad // n_bshard

    # Time chunking.
    T_chunk = max(1, min(t_chunk, T))
    num_chunks = -(-T // T_chunk)
    T_pad = num_chunks * T_chunk
    needs_mask = (T_pad != T)

    # --- input prep: pad, time-major, split into batch shards, flatten -------
    # TODO(synk): for large T*B*I this transpose is an extra HBM pass; feed
    # batch-first blocks through the BlockSpec instead.
    x_tm = jnp.zeros((T_pad, B_pad, I), jnp.float32).at[:T, :B, :].set(
        jnp.transpose(x, (1, 0, 2)))
    x_sh = (x_tm.reshape(T_pad, n_bshard, B_shard, I)
                .transpose(1, 0, 2, 3)
                .reshape(n_bshard, T_pad * B_shard, I)
                .astype(mxu_dtype))

    # --- weight prep: gate-lane padding, transposes, dtype --------------------
    def pad_gate_cols(w_t):           # (rows, 4H) -> (rows, 4Hg), zero-padded
        rows = w_t.shape[0]
        out = jnp.zeros((rows, 4 * Hg), jnp.float32)
        for k in range(4):
            out = out.at[:, k * Hg:k * Hg + H].set(w_t[:, k * H:(k + 1) * H])
        return out

    w_ih_t = pad_gate_cols(params["w_ih"].T.astype(jnp.float32))         # (I, 4Hg)
    w_hh_t = jnp.zeros((Hg, 4 * Hg), jnp.float32).at[:H, :].set(
        pad_gate_cols(params["w_hh"].T.astype(jnp.float32)))             # (Hg, 4Hg)
    b_comb = pad_gate_cols(
        (params["b_ih"] + params["b_hh"]).reshape(1, 4 * H).astype(jnp.float32))
    w_fc_t = jnp.zeros((Hg, O_pad), jnp.float32).at[:H, :O].set(
        params["w_fc"].T.astype(jnp.float32))                            # (Hg, O_pad)
    b_fc = jnp.zeros((1, O_pad), jnp.float32).at[:, :O].set(
        params["b_fc"].astype(jnp.float32))

    w_ih_t = w_ih_t.astype(mxu_dtype)
    w_hh_t = w_hh_t.astype(mxu_dtype)
    w_fc_t = w_fc_t.astype(mxu_dtype)
    # biases stay f32 (added after the f32-accumulated matmuls)

    # --- VMEM budget -----------------------------------------------------------
    msz = jnp.dtype(mxu_dtype).itemsize
    est = (2 * T_chunk * B_shard * I * msz                              # x block (x2 buf)
           + 2 * (I * 4 * Hg + Hg * 4 * Hg + Hg * O_pad) * msz          # weights
           + 2 * (4 * Hg + O_pad) * 4                                   # biases
           + T_chunk * B_shard * 4 * Hg * msz                           # xg scratch
           + 2 * B_shard * Hg * 4                                       # h, c
           + 2 * B_shard * O_pad * 4)                                   # out block
    vmem_limit = int(min(64 << 20, max(32 << 20, 2 * est + (4 << 20))))

    kernel = _make_lstm_kernel(T, T_chunk, Hg, unroll, mxu_dtype, needs_mask)

    out_pad = pl.pallas_call(
        kernel,
        out_shape=jax.ShapeDtypeStruct((B_pad, O_pad), jnp.float32),
        grid_spec=pltpu.PrefetchScalarGridSpec(
            num_scalar_prefetch=0,
            grid=(n_bshard, num_chunks),
            in_specs=[
                # x: per batch-shard, per time-chunk block, squeezed shard dim
                pl.BlockSpec((None, T_chunk * B_shard, I),
                             lambda b, c: (b, c, 0)),
                pl.BlockSpec((I, 4 * Hg), lambda b, c: (0, 0)),       # W_ih^T
                pl.BlockSpec((Hg, 4 * Hg), lambda b, c: (0, 0)),      # W_hh^T
                pl.BlockSpec((1, 4 * Hg), lambda b, c: (0, 0)),       # b_ih+b_hh
                pl.BlockSpec((Hg, O_pad), lambda b, c: (0, 0)),       # W_fc^T
                pl.BlockSpec((1, O_pad), lambda b, c: (0, 0)),        # b_fc
            ],
            out_specs=pl.BlockSpec((B_shard, O_pad), lambda b, c: (b, 0)),
            scratch_shapes=[
                pltpu.VMEM((T_chunk, B_shard, 4 * Hg), mxu_dtype),    # xg
                pltpu.VMEM((B_shard, Hg), jnp.float32),               # h carry
                pltpu.VMEM((B_shard, Hg), jnp.float32),               # c carry
            ],
        ),
        compiler_params=pltpu.CompilerParams(
            dimension_semantics=("parallel", "arbitrary"),
            vmem_limit_bytes=vmem_limit),
    )(x_sh, w_ih_t, w_hh_t, b_comb, w_fc_t, b_fc)

    return out_pad[:B, :O]


def reference_forward(x, params):
    """Pure-JAX f32 reference matching torch.nn.LSTM + Linear semantics."""
    B = x.shape[0]
    H = params["w_hh"].shape[1]

    def step(carry, x_t):
        h, c = carry
        gates = (x_t @ params["w_ih"].T + params["b_ih"]
                 + h @ params["w_hh"].T + params["b_hh"])
        i_g = jax.nn.sigmoid(gates[:, 0 * H:1 * H])
        f_g = jax.nn.sigmoid(gates[:, 1 * H:2 * H])
        g_g = jnp.tanh(gates[:, 2 * H:3 * H])
        o_g = jax.nn.sigmoid(gates[:, 3 * H:4 * H])
        c_new = f_g * c + i_g * g_g
        h_new = o_g * jnp.tanh(c_new)
        return (h_new, c_new), None

    h0 = jnp.zeros((B, H), jnp.float32)
    c0 = jnp.zeros((B, H), jnp.float32)
    (hT, _), _ = lax.scan(step, (h0, c0), jnp.transpose(x, (1, 0, 2)))
    return hT @ params["w_fc"].T + params["b_fc"]


def init_params(key, input_size, hidden_size, output_size):
    """Deterministic PyTorch-style uniform(-1/sqrt(H), 1/sqrt(H)) init."""
    ks = jax.random.split(key, 6)
    s = 1.0 / jnp.sqrt(hidden_size)
    return {
        "w_ih": jax.random.uniform(ks[0], (4 * hidden_size, input_size),
                                   jnp.float32, -s, s),
        "w_hh": jax.random.uniform(ks[1], (4 * hidden_size, hidden_size),
                                   jnp.float32, -s, s),
        "b_ih": jax.random.uniform(ks[2], (4 * hidden_size,), jnp.float32, -s, s),
        "b_hh": jax.random.uniform(ks[3], (4 * hidden_size,), jnp.float32, -s, s),
        "w_fc": jax.random.uniform(ks[4], (output_size, hidden_size),
                                   jnp.float32, -s, s),
        "b_fc": jax.random.uniform(ks[5], (output_size,), jnp.float32, -s, s),
    }


if __name__ == "__main__":
    B, T, I, H, O = 2, 8, 4, 32, 8   # batch, seq, input_size, hidden_size, output_size

    key = jax.random.PRNGKey(0)
    k_x, k_p = jax.random.split(key)
    x = jax.random.normal(k_x, (B, T, I), jnp.float32)
    params = init_params(k_p, I, H, O)

    ref = jax.block_until_ready(reference_forward(x, params))

    # Structural validation: f32 MXU path must match the f32 reference tightly
    # (t_chunk=4 -> 2 time chunks, exercises the cross-chunk h/c carry).
    out_f32 = jax.block_until_ready(
        lstm_model_forward(x, params, t_chunk=4, mxu_dtype=jnp.float32))
    assert out_f32.shape == (B, O)
    assert jnp.allclose(out_f32, ref, atol=1e-5, rtol=1e-5), (out_f32, ref)

    # Production path: bf16 MXU operands (f32 accumulation / gate math);
    # relaxed tolerance vs the f32 reference per the bf16 rounding.
    out_bf16 = jax.block_until_ready(
        lstm_model_forward(x, params, t_chunk=4, mxu_dtype=jnp.bfloat16))
    assert out_bf16.shape == (B, O)
    assert jnp.allclose(out_bf16, ref, atol=5e-2, rtol=5e-2), (out_bf16, ref)

    print("KERNEL_OK")
</pallas_src>

<mosaic_0001>
module attributes {stable_mosaic.version = 11 : i64} {
  func.func @kernel(%arg0: i32, %arg1: i32, %arg2: memref<1x32x4xf32, #tpu.memory_space<vmem>>, %arg3: memref<4x512xf32, #tpu.memory_space<vmem>>, %arg4: memref<128x512xf32, #tpu.memory_space<vmem>>, %arg5: memref<1x512xf32, #tpu.memory_space<vmem>>, %arg6: memref<128x128xf32, #tpu.memory_space<vmem>>, %arg7: memref<1x128xf32, #tpu.memory_space<vmem>>, %arg8: memref<8x128xf32, #tpu.memory_space<vmem>>, %arg9: memref<4x8x512xf32, #tpu.memory_space<vmem>>, %arg10: memref<8x128xf32, #tpu.memory_space<vmem>>, %arg11: memref<8x128xf32, #tpu.memory_space<vmem>>) attributes {dimension_semantics = [#tpu.dimension_semantics<parallel>, #tpu.dimension_semantics<arbitrary>], iteration_bounds = array<i64: 1, 2>, scalar_prefetch = 0 : i64, scratch_operands = 3 : i64, tpu.core_type = #tpu.core_type<tc>, window_params = [{transform_indices = @transform_0, window_bounds = array<i64: 1, 32, 4>}, {pipeline_mode = #tpu.pipeline_mode<synchronous>, transform_indices = @transform_1, window_bounds = array<i64: 4, 512>}, {pipeline_mode = #tpu.pipeline_mode<synchronous>, transform_indices = @transform_2, window_bounds = array<i64: 128, 512>}, {pipeline_mode = #tpu.pipeline_mode<synchronous>, transform_indices = @transform_3, window_bounds = array<i64: 1, 512>}, {pipeline_mode = #tpu.pipeline_mode<synchronous>, transform_indices = @transform_4, window_bounds = array<i64: 128, 128>}, {pipeline_mode = #tpu.pipeline_mode<synchronous>, transform_indices = @transform_5, window_bounds = array<i64: 1, 128>}, {transform_indices = @transform_6, window_bounds = array<i64: 8, 128>}]} {
    %c0 = arith.constant 0 : index
    %c0_0 = arith.constant 0 : index
    %c0_1 = arith.constant 0 : index
    %0 = vector.load %arg2[%c0, %c0_0, %c0_1] : memref<1x32x4xf32, #tpu.memory_space<vmem>>, vector<1x32x4xf32>
    %1 = vector.shape_cast %0 : vector<1x32x4xf32> to vector<32x4xf32>
    %c0_2 = arith.constant 0 : index
    %c0_3 = arith.constant 0 : index
    %2 = vector.load %arg3[%c0_2, %c0_3] : memref<4x512xf32, #tpu.memory_space<vmem>>, vector<4x512xf32>
    %cst = arith.constant dense<0.000000e+00> : vector<32x512xf32>
    %3 = tpu.matmul %1, %2, %cst {dimension_numbers = #tpu.dot_dimension_numbers<[1], [0], [0], [1], [0, 0, 1, 1], [], []>} : vector<32x4xf32>, vector<4x512xf32>, vector<32x512xf32> -> vector<32x512xf32>
    %c0_4 = arith.constant 0 : index
    %c0_5 = arith.constant 0 : index
    %4 = vector.load %arg5[%c0_4, %c0_5] : memref<1x512xf32, #tpu.memory_space<vmem>>, vector<1x512xf32>
    %5 = vector.broadcast %4 : vector<1x512xf32> to vector<32x512xf32>
    %6 = arith.addf %3, %5 : vector<32x512xf32>
    %7 = vector.shape_cast %6 : vector<32x512xf32> to vector<4x8x512xf32>
    %c0_6 = arith.constant 0 : index
    %c0_7 = arith.constant 0 : index
    %c0_8 = arith.constant 0 : index
    %8 = vector.load %arg9[%c0_6, %c0_7, %c0_8] : memref<4x8x512xf32, #tpu.memory_space<vmem>>, vector<4x8x512xf32>
    tpu.vector_store %arg9[%c0_6, %c0_7, %c0_8], %7 {strides = array<i32>} : memref<4x8x512xf32, #tpu.memory_space<vmem>>, vector<4x8x512xf32>,
    %c0_i32 = arith.constant 0 : i32
    %9 = arith.cmpi eq, %arg1, %c0_i32 : i32
    %10 = arith.extui %9 : i1 to i32
    %c0_i32_9 = arith.constant 0 : i32
    %11 = arith.cmpi ne, %10, %c0_i32_9 : i32
    scf.if %11 {
      %cst_53 = arith.constant 0.000000e+00 : f32
      %143 = vector.broadcast %cst_53 : f32 to vector<8x128xf32>
      %c0_54 = arith.constant 0 : index
      %c0_55 = arith.constant 0 : index
      %144 = vector.load %arg10[%c0_54, %c0_55] : memref<8x128xf32, #tpu.memory_space<vmem>>, vector<8x128xf32>
      tpu.vector_store %arg10[%c0_54, %c0_55], %143 {strides = array<i32>} : memref<8x128xf32, #tpu.memory_space<vmem>>, vector<8x128xf32>,
      %cst_56 = arith.constant 0.000000e+00 : f32
      %145 = vector.broadcast %cst_56 : f32 to vector<8x128xf32>
      %c0_57 = arith.constant 0 : index
      %c0_58 = arith.constant 0 : index
      %146 = vector.load %arg11[%c0_57, %c0_58] : memref<8x128xf32, #tpu.memory_space<vmem>>, vector<8x128xf32>
      tpu.vector_store %arg11[%c0_57, %c0_58], %145 {strides = array<i32>} : memref<8x128xf32, #tpu.memory_space<vmem>>, vector<8x128xf32>,
    } else {
    }
    %c0_10 = arith.constant 0 : index
    %c0_11 = arith.constant 0 : index
    %12 = vector.load %arg10[%c0_10, %c0_11] : memref<8x128xf32, #tpu.memory_space<vmem>>, vector<8x128xf32>
    %c0_12 = arith.constant 0 : index
    %c0_13 = arith.constant 0 : index
    %13 = vector.load %arg11[%c0_12, %c0_13] : memref<8x128xf32, #tpu.memory_space<vmem>>, vector<8x128xf32>
    %c0_i32_14 = arith.constant 0 : i32
    %14 = arith.index_cast %c0_i32_14 : i32 to index
    %c0_15 = arith.constant 0 : index
    %c0_16 = arith.constant 0 : index
    %15 = vector.load %arg9[%14, %c0_15, %c0_16] : memref<4x8x512xf32, #tpu.memory_space<vmem>>, vector<1x8x512xf32>
    %16 = vector.shape_cast %15 : vector<1x8x512xf32> to vector<8x512xf32>
    %c0_17 = arith.constant 0 : index
    %c0_18 = arith.constant 0 : index
    %17 = vector.load %arg4[%c0_17, %c0_18] : memref<128x512xf32, #tpu.memory_space<vmem>>, vector<128x512xf32>
    %cst_19 = arith.constant dense<0.000000e+00> : vector<8x512xf32>
    %18 = tpu.matmul %12, %17, %cst_19 {dimension_numbers = #tpu.dot_dimension_numbers<[1], [0], [0], [1], [0, 0, 1, 1], [], []>} : vector<8x128xf32>, vector<128x512xf32>, vector<8x512xf32> -> vector<8x512xf32>
    %19 = arith.addf %16, %18 : vector<8x512xf32>
    %20 = vector.extract_strided_slice %19 {offsets = [0, 0], sizes = [8, 128], strides = [1, 1]} : vector<8x512xf32> to vector<8x128xf32>
    %21 = arith.negf %20 : vector<8x128xf32>
    %22 = math.exp %21 : vector<8x128xf32>
    %cst_20 = arith.constant 1.000000e+00 : f32
    %23 = vector.broadcast %cst_20 : f32 to vector<8x128xf32>
    %24 = arith.addf %23, %22 : vector<8x128xf32>
    %25 = arith.divf %23, %24 : vector<8x128xf32>
    %26 = vector.extract_strided_slice %19 {offsets = [0, 128], sizes = [8, 128], strides = [1, 1]} : vector<8x512xf32> to vector<8x128xf32>
    %27 = arith.negf %26 : vector<8x128xf32>
    %28 = math.exp %27 : vector<8x128xf32>
    %cst_21 = arith.constant 1.000000e+00 : f32
    %29 = vector.broadcast %cst_21 : f32 to vector<8x128xf32>
    %30 = arith.addf %29, %28 : vector<8x128xf32>
    %31 = arith.divf %29, %30 : vector<8x128xf32>
    %32 = vector.extract_strided_slice %19 {offsets = [0, 256], sizes = [8, 128], strides = [1, 1]} : vector<8x512xf32> to vector<8x128xf32>
    %33 = math.tanh %32 : vector<8x128xf32>
    %34 = vector.extract_strided_slice %19 {offsets = [0, 384], sizes = [8, 128], strides = [1, 1]} : vector<8x512xf32> to vector<8x128xf32>
    %35 = arith.negf %34 : vector<8x128xf32>
    %36 = math.exp %35 : vector<8x128xf32>
    %cst_22 = arith.constant 1.000000e+00 : f32
    %37 = vector.broadcast %cst_22 : f32 to vector<8x128xf32>
    %38 = arith.addf %37, %36 : vector<8x128xf32>
    %39 = arith.divf %37, %38 : vector<8x128xf32>
    %40 = arith.mulf %31, %13 : vector<8x128xf32>
    %41 = arith.mulf %25, %33 : vector<8x128xf32>
    %42 = arith.addf %40, %41 : vector<8x128xf32>
    %43 = math.tanh %42 : vector<8x128xf32>
    %44 = arith.mulf %39, %43 : vector<8x128xf32>
    %c1_i32 = arith.constant 1 : i32
    %45 = arith.index_cast %c1_i32 : i32 to index
    %c0_23 = arith.constant 0 : index
    %c0_24 = arith.constant 0 : index
    %46 = vector.load %arg9[%45, %c0_23, %c0_24] : memref<4x8x512xf32, #tpu.memory_space<vmem>>, vector<1x8x512xf32>
    %47 = vector.shape_cast %46 : vector<1x8x512xf32> to vector<8x512xf32>
    %c0_25 = arith.constant 0 : index
    %c0_26 = arith.constant 0 : index
    %48 = vector.load %arg4[%c0_25, %c0_26] : memref<128x512xf32, #tpu.memory_space<vmem>>, vector<128x512xf32>
    %cst_27 = arith.constant dense<0.000000e+00> : vector<8x512xf32>
    %49 = tpu.matmul %44, %48, %cst_27 {dimension_numbers = #tpu.dot_dimension_numbers<[1], [0], [0], [1], [0, 0, 1, 1], [], []>} : vector<8x128xf32>, vector<128x512xf32>, vector<8x512xf32> -> vector<8x512xf32>
    %50 = arith.addf %47, %49 : vector<8x512xf32>
    %51 = vector.extract_strided_slice %50 {offsets = [0, 0], sizes = [8, 128], strides = [1, 1]} : vector<8x512xf32> to vector<8x128xf32>
    %52 = arith.negf %51 : vector<8x128xf32>
    %53 = math.exp %52 : vector<8x128xf32>
    %cst_28 = arith.constant 1.000000e+00 : f32
    %54 = vector.broadcast %cst_28 : f32 to vector<8x128xf32>
    %55 = arith.addf %54, %53 : vector<8x128xf32>
    %56 = arith.divf %54, %55 : vector<8x128xf32>
    %57 = vector.extract_strided_slice %50 {offsets = [0, 128], sizes = [8, 128], strides = [1, 1]} : vector<8x512xf32> to vector<8x128xf32>
    %58 = arith.negf %57 : vector<8x128xf32>
    %59 = math.exp %58 : vector<8x128xf32>
    %cst_29 = arith.constant 1.000000e+00 : f32
    %60 = vector.broadcast %cst_29 : f32 to vector<8x128xf32>
    %61 = arith.addf %60, %59 : vector<8x128xf32>
    %62 = arith.divf %60, %61 : vector<8x128xf32>
    %63 = vector.extract_strided_slice %50 {offsets = [0, 256], sizes = [8, 128], strides = [1, 1]} : vector<8x512xf32> to vector<8x128xf32>
    %64 = math.tanh %63 : vector<8x128xf32>
    %65 = vector.extract_strided_slice %50 {offsets = [0, 384], sizes = [8, 128], strides = [1, 1]} : vector<8x512xf32> to vector<8x128xf32>
    %66 = arith.negf %65 : vector<8x128xf32>
    %67 = math.exp %66 : vector<8x128xf32>
    %cst_30 = arith.constant 1.000000e+00 : f32
    %68 = vector.broadcast %cst_30 : f32 to vector<8x128xf32>
    %69 = arith.addf %68, %67 : vector<8x128xf32>
    %70 = arith.divf %68, %69 : vector<8x128xf32>
    %71 = arith.mulf %62, %42 : vector<8x128xf32>
    %72 = arith.mulf %56, %64 : vector<8x128xf32>
    %73 = arith.addf %71, %72 : vector<8x128xf32>
    %74 = math.tanh %73 : vector<8x128xf32>
    %75 = arith.mulf %70, %74 : vector<8x128xf32>
    %c2_i32 = arith.constant 2 : i32
    %76 = arith.index_cast %c2_i32 : i32 to index
    %c0_31 = arith.constant 0 : index
    %c0_32 = arith.constant 0 : index
    %77 = vector.load %arg9[%76, %c0_31, %c0_32] : memref<4x8x512xf32, #tpu.memory_space<vmem>>, vector<1x8x512xf32>
    %78 = vector.shape_cast %77 : vector<1x8x512xf32> to vector<8x512xf32>
    %c0_33 = arith.constant 0 : index
    %c0_34 = arith.constant 0 : index
    %79 = vector.load %arg4[%c0_33, %c0_34] : memref<128x512xf32, #tpu.memory_space<vmem>>, vector<128x512xf32>
    %cst_35 = arith.constant dense<0.000000e+00> : vector<8x512xf32>
    %80 = tpu.matmul %75, %79, %cst_35 {dimension_numbers = #tpu.dot_dimension_numbers<[1], [0], [0], [1], [0, 0, 1, 1], [], []>} : vector<8x128xf32>, vector<128x512xf32>, vector<8x512xf32> -> vector<8x512xf32>
    %81 = arith.addf %78, %80 : vector<8x512xf32>
    %82 = vector.extract_strided_slice %81 {offsets = [0, 0], sizes = [8, 128], strides = [1, 1]} : vector<8x512xf32> to vector<8x128xf32>
    %83 = arith.negf %82 : vector<8x128xf32>
    %84 = math.exp %83 : vector<8x128xf32>
    %cst_36 = arith.constant 1.000000e+00 : f32
    %85 = vector.broadcast %cst_36 : f32 to vector<8x128xf32>
    %86 = arith.addf %85, %84 : vector<8x128xf32>
    %87 = arith.divf %85, %86 : vector<8x128xf32>
    %88 = vector.extract_strided_slice %81 {offsets = [0, 128], sizes = [8, 128], strides = [1, 1]} : vector<8x512xf32> to vector<8x128xf32>
    %89 = arith.negf %88 : vector<8x128xf32>
    %90 = math.exp %89 : vector<8x128xf32>
    %cst_37 = arith.constant 1.000000e+00 : f32
    %91 = vector.broadcast %cst_37 : f32 to vector<8x128xf32>
    %92 = arith.addf %91, %90 : vector<8x128xf32>
    %93 = arith.divf %91, %92 : vector<8x128xf32>
    %94 = vector.extract_strided_slice %81 {offsets = [0, 256], sizes = [8, 128], strides = [1, 1]} : vector<8x512xf32> to vector<8x128xf32>
    %95 = math.tanh %94 : vector<8x128xf32>
    %96 = vector.extract_strided_slice %81 {offsets = [0, 384], sizes = [8, 128], strides = [1, 1]} : vector<8x512xf32> to vector<8x128xf32>
    %97 = arith.negf %96 : vector<8x128xf32>
    %98 = math.exp %97 : vector<8x128xf32>
    %cst_38 = arith.constant 1.000000e+00 : f32
    %99 = vector.broadcast %cst_38 : f32 to vector<8x128xf32>
    %100 = arith.addf %99, %98 : vector<8x128xf32>
    %101 = arith.divf %99, %100 : vector<8x128xf32>
    %102 = arith.mulf %93, %73 : vector<8x128xf32>
    %103 = arith.mulf %87, %95 : vector<8x128xf32>
    %104 = arith.addf %102, %103 : vector<8x128xf32>
    %105 = math.tanh %104 : vector<8x128xf32>
    %106 = arith.mulf %101, %105 : vector<8x128xf32>
    %c3_i32 = arith.constant 3 : i32
    %107 = arith.index_cast %c3_i32 : i32 to index
    %c0_39 = arith.constant 0 : index
    %c0_40 = arith.constant 0 : index
    %108 = vector.load %arg9[%107, %c0_39, %c0_40] : memref<4x8x512xf32, #tpu.memory_space<vmem>>, vector<1x8x512xf32>
    %109 = vector.shape_cast %108 : vector<1x8x512xf32> to vector<8x512xf32>
    %c0_41 = arith.constant 0 : index
    %c0_42 = arith.constant 0 : index
    %110 = vector.load %arg4[%c0_41, %c0_42] : memref<128x512xf32, #tpu.memory_space<vmem>>, vector<128x512xf32>
    %cst_43 = arith.constant dense<0.000000e+00> : vector<8x512xf32>
    %111 = tpu.matmul %106, %110, %cst_43 {dimension_numbers = #tpu.dot_dimension_numbers<[1], [0], [0], [1], [0, 0, 1, 1], [], []>} : vector<8x128xf32>, vector<128x512xf32>, vector<8x512xf32> -> vector<8x512xf32>
    %112 = arith.addf %109, %111 : vector<8x512xf32>
    %113 = vector.extract_strided_slice %112 {offsets = [0, 0], sizes = [8, 128], strides = [1, 1]} : vector<8x512xf32> to vector<8x128xf32>
    %114 = arith.negf %113 : vector<8x128xf32>
    %115 = math.exp %114 : vector<8x128xf32>
    %cst_44 = arith.constant 1.000000e+00 : f32
    %116 = vector.broadcast %cst_44 : f32 to vector<8x128xf32>
    %117 = arith.addf %116, %115 : vector<8x128xf32>
    %118 = arith.divf %116, %117 : vector<8x128xf32>
    %119 = vector.extract_strided_slice %112 {offsets = [0, 128], sizes = [8, 128], strides = [1, 1]} : vector<8x512xf32> to vector<8x128xf32>
    %120 = arith.negf %119 : vector<8x128xf32>
    %121 = math.exp %120 : vector<8x128xf32>
    %cst_45 = arith.constant 1.000000e+00 : f32
    %122 = vector.broadcast %cst_45 : f32 to vector<8x128xf32>
    %123 = arith.addf %122, %121 : vector<8x128xf32>
    %124 = arith.divf %122, %123 : vector<8x128xf32>
    %125 = vector.extract_strided_slice %112 {offsets = [0, 256], sizes = [8, 128], strides = [1, 1]} : vector<8x512xf32> to vector<8x128xf32>
    %126 = math.tanh %125 : vector<8x128xf32>
    %127 = vector.extract_strided_slice %112 {offsets = [0, 384], sizes = [8, 128], strides = [1, 1]} : vector<8x512xf32> to vector<8x128xf32>
    %128 = arith.negf %127 : vector<8x128xf32>
    %129 = math.exp %128 : vector<8x128xf32>
    %cst_46 = arith.constant 1.000000e+00 : f32
    %130 = vector.broadcast %cst_46 : f32 to vector<8x128xf32>
    %131 = arith.addf %130, %129 : vector<8x128xf32>
    %132 = arith.divf %130, %131 : vector<8x128xf32>
    %133 = arith.mulf %124, %104 : vector<8x128xf32>
    %134 = arith.mulf %118, %126 : vector<8x128xf32>
    %135 = arith.addf %133, %134 : vector<8x128xf32>
    %136 = math.tanh %135 : vector<8x128xf32>
    %137 = arith.mulf %132, %136 : vector<8x128xf32>
    %c4_i32 = arith.constant 4 : i32
    %c0_47 = arith.constant 0 : index
    %c0_48 = arith.constant 0 : index
    %138 = vector.load %arg10[%c0_47, %c0_48] : memref<8x128xf32, #tpu.memory_space<vmem>>, vector<8x128xf32>
    tpu.vector_store %arg10[%c0_47, %c0_48], %137 {strides = array<i32>} : memref<8x128xf32, #tpu.memory_space<vmem>>, vector<8x128xf32>,
    %c0_49 = arith.constant 0 : index
    %c0_50 = arith.constant 0 : index
    %139 = vector.load %arg11[%c0_49, %c0_50] : memref<8x128xf32, #tpu.memory_space<vmem>>, vector<8x128xf32>
    tpu.vector_store %arg11[%c0_49, %c0_50], %135 {strides = array<i32>} : memref<8x128xf32, #tpu.memory_space<vmem>>, vector<8x128xf32>,
    %c1_i32_51 = arith.constant 1 : i32
    %140 = arith.cmpi eq, %arg1, %c1_i32_51 : i32
    %141 = arith.extui %140 : i1 to i32
    %c0_i32_52 = arith.constant 0 : i32
    %142 = arith.cmpi ne, %141, %c0_i32_52 : i32
    scf.if %142 {
      %c0_53 = arith.constant 0 : index
      %c0_54 = arith.constant 0 : index
      %143 = vector.load %arg6[%c0_53, %c0_54] : memref<128x128xf32, #tpu.memory_space<vmem>>, vector<128x128xf32>
      %cst_55 = arith.constant dense<0.000000e+00> : vector<8x128xf32>
      %144 = tpu.matmul %137, %143, %cst_55 {dimension_numbers = #tpu.dot_dimension_numbers<[1], [0], [0], [1], [0, 0, 1, 1], [], []>} : vector<8x128xf32>, vector<128x128xf32>, vector<8x128xf32> -> vector<8x128xf32>
      %c0_56 = arith.constant 0 : index
      %c0_57 = arith.constant 0 : index
      %145 = vector.load %arg7[%c0_56, %c0_57] : memref<1x128xf32, #tpu.memory_space<vmem>>, vector<1x128xf32>
      %146 = vector.broadcast %145 : vector<1x128xf32> to vector<8x128xf32>
      %147 = arith.addf %144, %146 : vector<8x128xf32>
      %c0_58 = arith.constant 0 : index
      %c0_59 = arith.constant 0 : index
      %148 = vector.load %arg8[%c0_58, %c0_59] : memref<8x128xf32, #tpu.memory_space<vmem>>, vector<8x128xf32>
      tpu.vector_store %arg8[%c0_58, %c0_59], %147 {strides = array<i32>} : memref<8x128xf32, #tpu.memory_space<vmem>>, vector<8x128xf32>,
    } else {
    }
    return
  }
  func.func @transform_0(%arg0: i32, %arg1: i32) -> (i32, i32, i32) {
    %c0_i32 = arith.constant 0 : i32
    %c0_i32_0 = arith.constant 0 : i32
    return %arg0, %arg1, %c0_i32 : i32, i32, i32
  }
  func.func @transform_1(%arg0: i32, %arg1: i32) -> (i32, i32) {
    %c0_i32 = arith.constant 0 : i32
    %c0_i32_0 = arith.constant 0 : i32
    %c0_i32_1 = arith.constant 0 : i32
    return %c0_i32, %c0_i32_0 : i32, i32
  }
  func.func @transform_2(%arg0: i32, %arg1: i32) -> (i32, i32) {
    %c0_i32 = arith.constant 0 : i32
    %c0_i32_0 = arith.constant 0 : i32
    %c0_i32_1 = arith.constant 0 : i32
    return %c0_i32, %c0_i32_0 : i32, i32
  }
  func.func @transform_3(%arg0: i32, %arg1: i32) -> (i32, i32) {
    %c0_i32 = arith.constant 0 : i32
    %c0_i32_0 = arith.constant 0 : i32
    %c0_i32_1 = arith.constant 0 : i32
    return %c0_i32, %c0_i32_0 : i32, i32
  }
  func.func @transform_4(%arg0: i32, %arg1: i32) -> (i32, i32) {
    %c0_i32 = arith.constant 0 : i32
    %c0_i32_0 = arith.constant 0 : i32
    %c0_i32_1 = arith.constant 0 : i32
    return %c0_i32, %c0_i32_0 : i32, i32
  }
  func.func @transform_5(%arg0: i32, %arg1: i32) -> (i32, i32) {
    %c0_i32 = arith.constant 0 : i32
    %c0_i32_0 = arith.constant 0 : i32
    %c0_i32_1 = arith.constant 0 : i32
    return %c0_i32, %c0_i32_0 : i32, i32
  }
  func.func @transform_6(%arg0: i32, %arg1: i32) -> (i32, i32) {
    %c0_i32 = arith.constant 0 : i32
    %c0_i32_0 = arith.constant 0 : i32
    return %arg0, %c0_i32 : i32, i32
  }
}

</mosaic_0001>

<bundles_post_ra>
// kernel: tpu_custom_call.1
= control target key start
LH: loop header
LB: loop body
LE: loop exit
PB: predicated region body
PF: predicated region fallthrough
CT: control target
= control target key end

     0   :  { %11 = vsyncpa [#allocation6], 0  ;;  %s2131_s0 = inlined_call_operand.vmem [shape: f32[1,64,4], index: 0, kind: input, shape index: {}]   ;;  %s2132_s1 = inlined_call_operand.vmem [shape: f32[4,512], index: 1, kind: input, shape index: {}]   ;;  %s2133_s2 = inlined_call_operand.hbm [shape: f32[128,512], index: 2, kind: input, shape index: {}]   ;;  %s2134_s3 = inlined_call_operand.vmem [shape: f32[1,512], index: 3, kind: input, shape index: {}]   ;;  %s2135_s4 = inlined_call_operand.hbm [shape: f32[128,128], index: 4, kind: input, shape index: {}]   ;;  %s2136_s5 = inlined_call_operand.vmem [shape: f32[1,128], index: 5, kind: input, shape index: {}]   ;;  %s2137_s6 = inlined_call_operand.hbm [shape: f32[8,128], index: 6, kind: output, shape index: {}]  }
   0x1   :  { %12 = vsyncpa [#allocation9], 0 }
   0x2   :  { %13 = vsyncpa [#allocation7], 0  ;;  %s1636_s21 = smov 0   ;;  %s1638_s22 = smov 0  }
   0x3   :  { %s1640_s23 = smov 0  }
   0x4 LB: > { %s1299_s24 = sadd.s32 4294967295, %s1591_s23   ;;  %s28_s25 = sadd.s32 1, %s1587_s22  ;;  %s1591_s23 = sphi %s1640_s23, %s19_s23   ;;  %s1587_s22 = sphi %s1638_s22, %s2223_s22   ;;  %s1583_s21 = sphi %s1636_s21, %s2222_s21  }
   0x5   : > { %p29_p0 = scmp.ge.s32.totalorder %s28_s25, 2  ;;  %p1300_p1 = scmp.ge.s32.totalorder %s1591_s23, 1 }
   0x6   : > { %p195_p2 = scmp.lt.s32.totalorder %s1591_s23, 3  ;;  %p1663_p4 = scmp.eq.s32.totalorder %s1299_s24, 0 }
   0x7   : > { %s2225_s25 = smov (%p29_p0, %s28_s25), 0  ;;  %s209_s30 = sshll.u32 %s2133_s2, 4  ;;  %s210_s30 = int_to_ptr.hbm [resolvable:$true] %s209_s30 }
   0x8   : > { %p1657_p3 = pnand %p1300_p1, %p195_p2  ;;  %s1593_s7 = smov [#allocation5]  }
   0x9   : > { %s211_s8 = sshll.u32 %s1593_s7, 4  ;;  %s226_s11 = sshll.u32 %s2135_s4, 4  ;;  %s212_s8 = int_to_ptr.vmem [resolvable:$true] %s211_s8  ;;  %s227_s11 = int_to_ptr.hbm [resolvable:$true] %s226_s11 }
   0xa   : > { %p1359_p5 = pneg %p1657_p3  ;;  %s1594_s12 = smov 512  }
   0xb   : > { %s1595_s13 = smov 32   ;;  %s1596_s14 = smov [#allocation8]  }
   0xc   : > { %p1360_p6 = pnand %p1663_p4, %p1359_p5  ;;  %s228_s15 = sshll.u32 %s1596_s14, 4  ;;  %s229_s15 = int_to_ptr.vmem [resolvable:$true] %s228_s15 }
   0xd   : > { %s1597_s16 = smov 128   ;;  %s1598_s17 = smov 8  }
   0xe   : > { %1362 = dma.hbm_to_vmem [thread:$0]  (!%p1360_p6), %s210_s30, 8192, %s212_s8, [#allocation6], %s1594_s12, %s1594_s12, %s1595_s13  }
   0xf   : > { %1365 = dma.hbm_to_vmem [thread:$0]  (!%p1360_p6), %s227_s11, 2048, %s229_s15, [#allocation9], %s1597_s16, %s1597_s16, %s1598_s17  }
  0x10   : > { %260 = sbr.rel (%p1657_p3) target bundleno = 1077 (0x435), region = 44 }
  0x15   : > { %1570 = dma.done.wait (%p1663_p4), [#allocation6], 8192  }
  0x16   : > { %1572 = vsyncadd (%p1663_p4), [#allocation6], 4294959104 }
  0x17   : > { %1574 = dma.done.wait (%p1663_p4), [#allocation9], 2048  }
  0x18   : > { %1576 = vsyncadd (%p1663_p4), [#allocation9], 4294965248  ;;  %s1307_s18 = sshll.u32 %s1583_s21, 2  ;;  %v310_v0 = vld [vmem:[%s2132_s1 + $0x8] sm:$0xff]  ;;  %v309_v1 = vld [vmem:[%s2132_s1] sm:$0xff]  ;;  %vm343_vm0 = vcmask 1043456  }
  0x19   : > { %p298_p7 = scmp.lt.s32.totalorder %s1307_s18, 7  ;;  %325 = vst [vmem:[#allocation1 + $0x10] ss:$2 sm:$0xff] %v310_v0  ;;  %vm330_vm1 = vcmask 31744   ;;  %v311_v10 = vld [vmem:[%s2134_s3] sm:$0xf] }
  0x1a   : > { %323 = vst [vmem:[#allocation1] ss:$2 sm:$0xff] %v309_v1  ;;  %v313_v11 = vperm.slane %v311_v10, 0  ;;  %v314_v12 = vperm.slane %v311_v10, 1  ;;  %v315_v17 = vperm.slane %v311_v10, 2  ;;  %v316_v18 = vperm.slane %v311_v10, 3 }
  0x1b   : > { %s2227_s18 = smov (!%p298_p7, %s1307_s18), 7  ;;  %p1329_p8 = scmp.ne.s32.totalorder %s1583_s21, 0 }
  0x1c   : > { %s1308_s29 = sshll.u32 %s2227_s18, 3 }
  0x1d   : > { %s303_s27 = scalar_lea.vmem %s2131_s0, %s1308_s29 }
  0x1e   : > { %v305_v2 = vld [vmem:[%s303_s27] sm:$0xff]  ;;  %v306_v7 = vld [vmem:[%s303_s27 + $0x8] sm:$0xff]  ;;  %v307_v8 = vld [vmem:[%s303_s27 + $0x10] sm:$0xff] }
  0x1f   : > { %v308_v9 = vld [vmem:[%s303_s27 + $0x18] sm:$0xff] }
  0x20   : > { %v328_v3 = vld.sshfl [vmem:[#allocation1 + $0x10] sm:$0xff pattern:$0x75316420]  ;;  %v329_v4 = vld.sshfl [vmem:[#allocation1 + $0x18] sm:$0xff pattern:$0x75316420] }
  0x21   : > { %1319 = vmatpush.msk.msra.mxu2 %vm343_vm0, %v328_v3  ;;  %1324 = vmatpush.msk.msra.mxu3 %vm343_vm0, %v329_v4  ;;  %v326_v5 = vld.sshfl [vmem:[#allocation1] sm:$0xff pattern:$0x75316420]  ;;  %v327_v6 = vld.sshfl [vmem:[#allocation1 + $0x8] sm:$0xff pattern:$0x75316420] }
  0x22   : > { %1320 = vmatmul.msk.f32.vlgmr.msra.gmra.mxu2 %vm330_vm1, %v305_v2  ;;  %1325 = vmatmul.msk.f32.vlgmr.msra.gmra.mxu3 %vm330_vm1, %v305_v2 }
  0x23   : > { %1309 = vmatpush.msk.msra.mxu0 %vm343_vm0, %v326_v5  ;;  %1314 = vmatpush.msk.msra.mxu1 %vm343_vm0, %v327_v6 }
  0x24   : > { %1310 = vmatmul.msk.f32.vlgmr.msra.gmra.mxu0 %vm330_vm1, %v305_v2  ;;  %1315 = vmatmul.msk.f32.vlgmr.msra.gmra.mxu1 %vm330_vm1, %v305_v2 }
  0x2a   : > { %1321 = vmatmul.msk.f32.gmra.mxu2 %vm330_vm1, %v306_v7  ;;  %1326 = vmatmul.msk.f32.gmra.mxu3 %vm330_vm1, %v306_v7 }
  0x2c   : > { %1311 = vmatmul.msk.f32.gmra.mxu0 %vm330_vm1, %v306_v7  ;;  %1316 = vmatmul.msk.f32.gmra.mxu1 %vm330_vm1, %v306_v7 }
  0x32   : > { %1322 = vmatmul.msk.f32.gmra.mxu2 %vm330_vm1, %v307_v8  ;;  %1327 = vmatmul.msk.f32.gmra.mxu3 %vm330_vm1, %v307_v8 }
  0x34   : > { %1312 = vmatmul.msk.f32.gmra.mxu0 %vm330_vm1, %v307_v8  ;;  %1317 = vmatmul.msk.f32.gmra.mxu1 %vm330_vm1, %v307_v8 }
  0x3a   : > { %1323 = vmatmul.msk.f32.gmra.mxu2 %vm330_vm1, %v308_v9  ;;  %1328 = vmatmul.msk.f32.gmra.mxu3 %vm330_vm1, %v308_v9 }
  0x3c   : > { %1313 = vmatmul.msk.f32.gmra.mxu0 %vm330_vm1, %v308_v9  ;;  %1318 = vmatmul.msk.f32.gmra.mxu1 %vm330_vm1, %v308_v9 }
  0xa1   : > { %v369_v13 = vpop.f32.mrf.mxu0  ;;  %v398_v14 = vpop.f32.mrf.mxu1 }
  0xa2   : > { %v370_v15 = vadd.f32 %v369_v13, %v313_v11  ;;  %v399_v16 = vadd.f32 %v398_v14, %v314_v12 }
  0xa4   : > { %468 = vst [vmem:[#allocation2 + $0x30] sm:$0xff] %v370_v15 }
  0xa5   : > { %469 = vst [vmem:[#allocation2] sm:$0xff] %v399_v16  ;;  %v427_v19 = vpop.f32.mrf.mxu2  ;;  %v456_v20 = vpop.f32.mrf.mxu3 }
  0xa6   : > { %v428_v21 = vadd.f32 %v427_v19, %v315_v17  ;;  %v457_v22 = vadd.f32 %v456_v20, %v316_v18 }
  0xa8   : > { %470 = vst [vmem:[#allocation2 + $0x58] sm:$0xff] %v428_v21 }
  0xa9   : > { %471 = vst [vmem:[#allocation2 + $0x18] sm:$0xff] %v457_v22  ;;  %v372_v23 = vpop.f32.mrf.mxu0  ;;  %v401_v24 = vpop.f32.mrf.mxu1 }
  0xaa   : > { %v373_v25 = vadd.f32 %v372_v23, %v313_v11  ;;  %v402_v26 = vadd.f32 %v401_v24, %v314_v12 }
  0xac   : > { %472 = vst [vmem:[#allocation2 + $0x50] sm:$0xff] %v373_v25 }
  0xad   : > { %473 = vst [vmem:[#allocation2 + $0x68] sm:$0xff] %v402_v26  ;;  %v430_v27 = vpop.f32.mrf.mxu2  ;;  %v459_v28 = vpop.f32.mrf.mxu3 }
  0xae   : > { %v431_v29 = vadd.f32 %v430_v27, %v315_v17  ;;  %v460_v30 = vadd.f32 %v459_v28, %v316_v18 }
  0xb0   : > { %474 = vst [vmem:[#allocation2 + $0x8] sm:$0xff] %v431_v29 }
  0xb1   : > { %475 = vst [vmem:[#allocation2 + $0x48] sm:$0xff] %v460_v30  ;;  %v375_v31 = vpop.f32.mrf.mxu0  ;;  %v404_v32 = vpop.f32.mrf.mxu1 }
  0xb2   : > { %v376_v33 = vadd.f32 %v375_v31, %v313_v11  ;;  %v405_v34 = vadd.f32 %v404_v32, %v314_v12 }
  0xb4   : > { %476 = vst [vmem:[#allocation2 + $0x40] sm:$0xff] %v376_v33 }
  0xb5   : > { %477 = vst [vmem:[#allocation2 + $0x20] sm:$0xff] %v405_v34  ;;  %v433_v35 = vpop.f32.mrf.mxu2  ;;  %v462_v36 = vpop.f32.mrf.mxu3 }
  0xb6   : > { %v434_v37 = vadd.f32 %v433_v35, %v315_v17  ;;  %v463_v38 = vadd.f32 %v462_v36, %v316_v18 }
  0xb8   : > { %478 = vst [vmem:[#allocation2 + $0x10] sm:$0xff] %v434_v37 }
  0xb9   : > { %479 = vst [vmem:[#allocation2 + $0x38] sm:$0xff] %v463_v38  ;;  %v378_v39 = vpop.f32.mrf.mxu0  ;;  %v407_v40 = vpop.f32.mrf.mxu1 }
  0xba   : > { %v379_v41 = vadd.f32 %v378_v39, %v313_v11  ;;  %v408_v42 = vadd.f32 %v407_v40, %v314_v12 }
  0xbc   : > { %480 = vst [vmem:[#allocation2 + $0x60] sm:$0xff] %v379_v41 }
  0xbd   : > { %481 = vst [vmem:[#allocation2 + $0x70] sm:$0xff] %v408_v42  ;;  %v436_v43 = vpop.f32.mrf.mxu2  ;;  %v465_v44 = vpop.f32.mrf.mxu3  ;;  %487 = sbr.rel (%p1329_p8) target bundleno = 197 (0xc5), region = 56 }
  0xbe   : > { %v437_v45 = vadd.f32 %v436_v43, %v315_v17  ;;  %v466_v46 = vadd.f32 %v465_v44, %v316_v18 }
  0xc0   : > { %482 = vst [vmem:[#allocation2 + $0x78] sm:$0xff] %v437_v45 }
  0xc1   : > { %483 = vst [vmem:[#allocation2 + $0x28] sm:$0xff] %v466_v46 }
  0xc2   : > { %v1599_v47 = vmov 0.0  }
  0xc3   : > { %488 = vst [vmem:[#allocation3] sm:$0xff] %v1599_v47 }
  0xc4   : > { %489 = vst [vmem:[#allocation4] sm:$0xff] %v1599_v47 }
  0xc5 PF: > { %v1717_v48 = vld [vmem:[#allocation5 + $0x1e0] sm:$0xff]  ;;  %v1719_v49 = vld [vmem:[#allocation5 + $0x1e8] sm:$0xff]  ;;  %v1721_v50 = vld [vmem:[#allocation5 + $0x1f8] sm:$0xff]  ;;  %p1342_p9 = scmp.ne.s32.totalorder %s1583_s21, 1 }
  0xc6   : > { %2168 = vst [vmem:[#allocation14_spill] sm:$0xff] %v1717_v48  ;;  %560 = vmatpush.msrb.mxu0 %v1717_v48  ;;  %580 = vmatpush.msrb.mxu1 %v1719_v49  ;;  %v1725_v51 = vld [vmem:[#allocation5 + $0x1c0] sm:$0xff]  ;;  %v1727_v52 = vld [vmem:[#allocation5 + $0x1c8] sm:$0xff]  ;;  %v1729_v53 = vld [vmem:[#allocation5 + $0x1d8] sm:$0xff] }
  0xc7   : > { %620 = vmatpush.msrb.mxu3 %v1721_v50  ;;  %v1732_v54 = vld [vmem:[#allocation5 + $0x1a0] sm:$0xff]  ;;  %v1734_v55 = vld [vmem:[#allocation5 + $0x1a8] sm:$0xff]  ;;  %v1738_v56 = vld [vmem:[#allocation5 + $0x1b8] sm:$0xff] }
  0xc8   : > { %561 = vmatpush.msrb.mxu0 %v1725_v51  ;;  %581 = vmatpush.msrb.mxu1 %v1727_v52  ;;  %v1741_v57 = vld [vmem:[#allocation5 + $0x180] sm:$0xff]  ;;  %v1743_v58 = vld [vmem:[#allocation5 + $0x188] sm:$0xff]  ;;  %v1747_v59 = vld [vmem:[#allocation5 + $0x198] sm:$0xff] }
  0xc9   : > { %621 = vmatpush.msrb.mxu3 %v1729_v53  ;;  %v1750_v60 = vld [vmem:[#allocation5 + $0x160] sm:$0xff]  ;;  %v1752_v61 = vld [vmem:[#allocation5 + $0x168] sm:$0xff]  ;;  %v1756_v62 = vld [vmem:[#allocation5 + $0x178] sm:$0xff] }
  0xca   : > { %562 = vmatpush.msrb.mxu0 %v1732_v54  ;;  %582 = vmatpush.msrb.mxu1 %v1734_v55  ;;  %v1759_v63 = vld [vmem:[#allocation5 + $0x140] sm:$0xff]  ;;  %v1761_v0 = vld [vmem:[#allocation5 + $0x148] sm:$0xff]  ;;  %v1763_v1 = vld [vmem:[#allocation5 + $0x1f0] sm:$0xff] }
  0xcb   : > { %622 = vmatpush.msrb.mxu3 %v1738_v56  ;;  %v1767_v2 = vld [vmem:[#allocation5 + $0x158] sm:$0xff]  ;;  %v1769_v3 = vld [vmem:[#allocation5 + $0x1d0] sm:$0xff]  ;;  %v1772_v4 = vld [vmem:[#allocation5 + $0x120] sm:$0xff]  ;;  %600 = vmatpush.msrb.mxu2 %v1763_v1 }
  0xcc   : > { %563 = vmatpush.msrb.mxu0 %v1741_v57  ;;  %583 = vmatpush.msrb.mxu1 %v1743_v58  ;;  %v1774_v5 = vld [vmem:[#allocation5 + $0x128] sm:$0xff]  ;;  %v1779_v6 = vld [vmem:[#allocation5 + $0x138] sm:$0xff]  ;;  %v1781_v7 = vld [vmem:[#allocation5 + $0x1b0] sm:$0xff] }
  0xcd   : > { %623 = vmatpush.msrb.mxu3 %v1747_v59  ;;  %v1784_v8 = vld [vmem:[#allocation5 + $0x100] sm:$0xff]  ;;  %v1786_v9 = vld [vmem:[#allocation5 + $0x108] sm:$0xff]  ;;  %601 = vmatpush.msrb.mxu2 %v1769_v3  ;;  %v1791_v10 = vld [vmem:[#allocation5 + $0x118] sm:$0xff] }
  0xce   : > { %564 = vmatpush.msrb.mxu0 %v1750_v60  ;;  %584 = vmatpush.msrb.mxu1 %v1752_v61  ;;  %v1793_v11 = vld [vmem:[#allocation5 + $0x190] sm:$0xff]  ;;  %v1796_v12 = vld [vmem:[#allocation5 + $0xe0] sm:$0xff]  ;;  %v1798_v13 = vld [vmem:[#allocation5 + $0xe8] sm:$0xff] }
  0xcf   : > { %624 = vmatpush.msrb.mxu3 %v1756_v62  ;;  %602 = vmatpush.msrb.mxu2 %v1781_v7  ;;  %v1803_v14 = vld [vmem:[#allocation5 + $0xf8] sm:$0xff]  ;;  %v1805_v15 = vld [vmem:[#allocation5 + $0x170] sm:$0xff]  ;;  %v1808_v16 = vld [vmem:[#allocation5 + $0xc0] sm:$0xff] }
  0xd0   : > { %565 = vmatpush.msrb.mxu0 %v1759_v63  ;;  %585 = vmatpush.msrb.mxu1 %v1761_v0  ;;  %v1810_v17 = vld [vmem:[#allocation5 + $0xc8] sm:$0xff]  ;;  %v1815_v18 = vld [vmem:[#allocation5 + $0xd8] sm:$0xff]  ;;  %v1817_v19 = vld [vmem:[#allocation5 + $0x150] sm:$0xff] }
  0xd1   : > { %625 = vmatpush.msrb.mxu3 %v1767_v2  ;;  %603 = vmatpush.msrb.mxu2 %v1793_v11  ;;  %2169 = vst [vmem:[#allocation15_spill] sm:$0xff] %v1815_v18  ;;  %v1820_v20 = vld [vmem:[#allocation5 + $0xa0] sm:$0xff]  ;;  %v1822_v21 = vld [vmem:[#allocation5 + $0xa8] sm:$0xff]  ;;  %v1827_v22 = vld [vmem:[#allocation5 + $0xb8] sm:$0xff] }
  0xd2   : > { %566 = vmatpush.msrb.mxu0 %v1772_v4  ;;  %586 = vmatpush.msrb.mxu1 %v1774_v5  ;;  %2170 = vst [vmem:[#allocation16_spill] sm:$0xff] %v1820_v20  ;;  %v1829_v23 = vld [vmem:[#allocation5 + $0x130] sm:$0xff]  ;;  %v1832_v24 = vld [vmem:[#allocation5 + $0x80] sm:$0xff]  ;;  %v1834_v25 = vld [vmem:[#allocation5 + $0x88] sm:$0xff] }
  0xd3   : > { %626 = vmatpush.msrb.mxu3 %v1779_v6  ;;  %2171 = vst [vmem:[#allocation17_spill] sm:$0xff] %v1822_v21  ;;  %604 = vmatpush.msrb.mxu2 %v1805_v15  ;;  %v1839_v26 = vld [vmem:[#allocation5 + $0x98] sm:$0xff]  ;;  %v1841_v27 = vld [vmem:[#allocation5 + $0x110] sm:$0xff]  ;;  %v1844_v28 = vld [vmem:[#allocation5 + $0x60] sm:$0xff] }
  0xd4   : > { %567 = vmatpush.msrb.mxu0 %v1784_v8  ;;  %587 = vmatpush.msrb.mxu1 %v1786_v9  ;;  %2172 = vst [vmem:[#allocation18_spill] sm:$0xff] %v1827_v22  ;;  %v1846_v29 = vld [vmem:[#allocation5 + $0x68] sm:$0xff]  ;;  %v1851_v30 = vld [vmem:[#allocation5 + $0x78] sm:$0xff]  ;;  %v1853_v31 = vld [vmem:[#allocation5 + $0xf0] sm:$0xff] }
  0xd5   : > { %627 = vmatpush.msrb.mxu3 %v1791_v10  ;;  %2173 = vst [vmem:[#allocation19_spill] sm:$0xff] %v1832_v24  ;;  %605 = vmatpush.msrb.mxu2 %v1817_v19  ;;  %v1856_v32 = vld [vmem:[#allocation5 + $0x40] sm:$0xff]  ;;  %v1858_v33 = vld [vmem:[#allocation5 + $0x48] sm:$0xff]  ;;  %v1863_v34 = vld [vmem:[#allocation5 + $0x58] sm:$0xff] }
  0xd6   : > { %568 = vmatpush.msrb.mxu0 %v1796_v12  ;;  %588 = vmatpush.msrb.mxu1 %v1798_v13  ;;  %2174 = vst [vmem:[#allocation20_spill] sm:$0xff] %v1834_v25  ;;  %v1865_v35 = vld [vmem:[#allocation5 + $0xd0] sm:$0xff]  ;;  %v1868_v36 = vld [vmem:[#allocation5 + $0x20] sm:$0xff]  ;;  %v1870_v37 = vld [vmem:[#allocation5 + $0x28] sm:$0xff] }
  0xd7   : > { %628 = vmatpush.msrb.mxu3 %v1803_v14  ;;  %2175 = vst [vmem:[#allocation21_spill] sm:$0xff] %v1839_v26  ;;  %606 = vmatpush.msrb.mxu2 %v1829_v23  ;;  %v1875_v38 = vld [vmem:[#allocation5 + $0x38] sm:$0xff]  ;;  %v1877_v39 = vld [vmem:[#allocation5 + $0xb0] sm:$0xff]  ;;  %v1880_v40 = vld [vmem:[#allocation5] sm:$0xff] }
  0xd8   : > { %569 = vmatpush.msrb.mxu0 %v1808_v16  ;;  %589 = vmatpush.msrb.mxu1 %v1810_v17  ;;  %2176 = vst [vmem:[#allocation22_spill] sm:$0xff] %v1844_v28  ;;  %v1882_v41 = vld [vmem:[#allocation5 + $0x8] sm:$0xff]  ;;  %v1887_v42 = vld [vmem:[#allocation5 + $0x18] sm:$0xff]  ;;  %v490_v43 = vld [vmem:[#allocation3] sm:$0xff] }
  0xd9   : > { %629 = vmatpush.msrb.mxu3 %v1815_v18  ;;  %2177 = vst [vmem:[#allocation23_spill] sm:$0xff] %v1846_v29  ;;  %607 = vmatpush.msrb.mxu2 %v1841_v27  ;;  %v1893_v44 = vld [vmem:[#allocation5 + $0x90] sm:$0xff] }
  0xda   : > { %570 = vmatpush.msrb.mxu0 %v1820_v20  ;;  %590 = vmatpush.msrb.mxu1 %v1822_v21  ;;  %2178 = vst [vmem:[#allocation24_spill] sm:$0xff] %v1851_v30  ;;  %v1896_v45 = vld [vmem:[#allocation5 + $0x70] sm:$0xff] }
  0xdb   : > { %630 = vmatpush.msrb.mxu3 %v1827_v22  ;;  %2179 = vst [vmem:[#allocation25_spill] sm:$0xff] %v1856_v32  ;;  %608 = vmatpush.msrb.mxu2 %v1853_v31  ;;  %v1900_v46 = vld [vmem:[#allocation5 + $0x50] sm:$0xff] }
  0xdc   : > { %571 = vmatpush.msrb.mxu0 %v1832_v24  ;;  %591 = vmatpush.msrb.mxu1 %v1834_v25  ;;  %2180 = vst [vmem:[#allocation26_spill] sm:$0xff] %v1858_v33  ;;  %v1906_v47 = vld [vmem:[#allocation5 + $0x30] sm:$0xff] }
  0xdd   : > { %631 = vmatpush.msrb.mxu3 %v1839_v26  ;;  %2181 = vst [vmem:[#allocation27_spill] sm:$0xff] %v1863_v34  ;;  %609 = vmatpush.msrb.mxu2 %v1865_v35 }
  0xde   : > { %572 = vmatpush.msrb.mxu0 %v1844_v28  ;;  %592 = vmatpush.msrb.mxu1 %v1846_v29  ;;  %2182 = vst [vmem:[#allocation28_spill] sm:$0xff] %v1865_v35 }
  0xdf   : > { %632 = vmatpush.msrb.mxu3 %v1851_v30  ;;  %2183 = vst [vmem:[#allocation29_spill] sm:$0xff] %v1868_v36  ;;  %610 = vmatpush.msrb.mxu2 %v1877_v39 }
  0xe0   : > { %2184 = vst [vmem:[#allocation30_spill] sm:$0xff] %v1870_v37  ;;  %573 = vmatpush.msrb.mxu0 %v1856_v32  ;;  %593 = vmatpush.msrb.mxu1 %v1858_v33 }
  0xe1   : > { %2185 = vst [vmem:[#allocation31_spill] sm:$0xff] %v1875_v38  ;;  %633 = vmatpush.msrb.mxu3 %v1863_v34  ;;  %611 = vmatpush.msrb.mxu2 %v1893_v44 }
  0xe2   : > { %2186 = vst [vmem:[#allocation32_spill] sm:$0xff] %v1877_v39  ;;  %574 = vmatpush.msrb.mxu0 %v1868_v36  ;;  %594 = vmatpush.msrb.mxu1 %v1870_v37 }
  0xe3   : > { %2187 = vst [vmem:[#allocation33_spill] sm:$0xff] %v1880_v40  ;;  %634 = vmatpush.msrb.mxu3 %v1875_v38  ;;  %612 = vmatpush.msrb.mxu2 %v1896_v45 }
  0xe4   : > { %2188 = vst [vmem:[#allocation34_spill] sm:$0xff] %v1882_v41  ;;  %575 = vmatpush.msrb.mxu0 %v1880_v40  ;;  %595 = vmatpush.msrb.mxu1 %v1882_v41 }
  0xe5   : > { %2189 = vst [vmem:[#allocation35_spill] sm:$0xff] %v1887_v42  ;;  %635 = vmatpush.msrb.mxu3 %v1887_v42  ;;  %576 = vmatmul.f32.vlgmr.msrb.gmra.mxu0 %v490_v43 }
  0xe6   : > { %2190 = vst [vmem:[#allocation36_spill] sm:$0xff] %v1893_v44  ;;  %596 = vmatmul.f32.vlgmr.msrb.gmra.mxu1 %v490_v43  ;;  %636 = vmatmul.f32.vlgmr.msrb.gmra.mxu3 %v490_v43 }
  0xe7   : > { %2191 = vst [vmem:[#allocation37_spill] sm:$0xff] %v1896_v45  ;;  %712 = vmatpush.msra.mxu0 %v1717_v48  ;;  %732 = vmatpush.msra.mxu1 %v1719_v49  ;;  %v1912_v48 = vld [vmem:[#allocation5 + $0x10] sm:$0xff] }
  0xe8   : > { %2192 = vst [vmem:[#allocation38_spill] sm:$0xff] %v1900_v46  ;;  %772 = vmatpush.msra.mxu3 %v1721_v50  ;;  %613 = vmatpush.msrb.mxu2 %v1900_v46 }
  0xe9   : > { %713 = vmatpush.msra.mxu0 %v1725_v51  ;;  %2193 = vst [vmem:[#allocation39_spill] sm:$0xff] %v1906_v47  ;;  %733 = vmatpush.msra.mxu1 %v1727_v52 }
  0xea   : > { %773 = vmatpush.msra.mxu3 %v1729_v53  ;;  %2194 = vst [vmem:[#allocation40_spill] sm:$0xff] %v1912_v48  ;;  %614 = vmatpush.msrb.mxu2 %v1906_v47 }
  0xeb   : > { %714 = vmatpush.msra.mxu0 %v1732_v54  ;;  %734 = vmatpush.msra.mxu1 %v1734_v55 }
  0xec   : > { %774 = vmatpush.msra.mxu3 %v1738_v56  ;;  %615 = vmatpush.msrb.mxu2 %v1912_v48 }
  0xed   : > { %715 = vmatpush.msra.mxu0 %v1741_v57  ;;  %735 = vmatpush.msra.mxu1 %v1743_v58 }
  0xee   : > { %775 = vmatpush.msra.mxu3 %v1747_v59  ;;  %616 = vmatmul.f32.vlgmr.msrb.gmra.mxu2 %v490_v43  ;;  %v2195_v43 = vld [vmem:[#allocation14_spill] sm:$0xff] }
  0xef   : > { %716 = vmatpush.msra.mxu0 %v1750_v60  ;;  %736 = vmatpush.msra.mxu1 %v1752_v61 }
  0xf0   : > { %752 = vmatpush.msra.mxu2 %v1763_v1  ;;  %776 = vmatpush.msra.mxu3 %v1756_v62 }
  0xf1   : > { %717 = vmatpush.msra.mxu0 %v1759_v63  ;;  %737 = vmatpush.msra.mxu1 %v1761_v0 }
  0xf2   : > { %753 = vmatpush.msra.mxu2 %v1769_v3  ;;  %777 = vmatpush.msra.mxu3 %v1767_v2 }
  0xf3   : > { %718 = vmatpush.msra.mxu0 %v1772_v4  ;;  %738 = vmatpush.msra.mxu1 %v1774_v5 }
  0xf4   : > { %754 = vmatpush.msra.mxu2 %v1781_v7  ;;  %778 = vmatpush.msra.mxu3 %v1779_v6 }
  0xf5   : > { %719 = vmatpush.msra.mxu0 %v1784_v8  ;;  %739 = vmatpush.msra.mxu1 %v1786_v9 }
  0xf6   : > { %755 = vmatpush.msra.mxu2 %v1793_v11  ;;  %779 = vmatpush.msra.mxu3 %v1791_v10 }
  0xf7   : > { %720 = vmatpush.msra.mxu0 %v1796_v12  ;;  %740 = vmatpush.msra.mxu1 %v1798_v13 }
  0xf8   : > { %756 = vmatpush.msra.mxu2 %v1805_v15  ;;  %780 = vmatpush.msra.mxu3 %v1803_v14 }
  0xf9   : > { %721 = vmatpush.msra.mxu0 %v1808_v16  ;;  %741 = vmatpush.msra.mxu1 %v1810_v17 }
  0xfa   : > { %757 = vmatpush.msra.mxu2 %v1817_v19  ;;  %781 = vmatpush.msra.mxu3 %v1815_v18 }
  0xfb   : > { %722 = vmatpush.msra.mxu0 %v1820_v20  ;;  %742 = vmatpush.msra.mxu1 %v1822_v21 }
  0xfc   : > { %758 = vmatpush.msra.mxu2 %v1829_v23  ;;  %782 = vmatpush.msra.mxu3 %v1827_v22 }
  0xfd   : > { %723 = vmatpush.msra.mxu0 %v1832_v24  ;;  %743 = vmatpush.msra.mxu1 %v1834_v25 }
  0xfe   : > { %759 = vmatpush.msra.mxu2 %v1841_v27  ;;  %783 = vmatpush.msra.mxu3 %v1839_v26 }
  0xff   : > { %724 = vmatpush.msra.mxu0 %v1844_v28  ;;  %744 = vmatpush.msra.mxu1 %v1846_v29 }
 0x100   : > { %760 = vmatpush.msra.mxu2 %v1853_v31  ;;  %784 = vmatpush.msra.mxu3 %v1851_v30 }
 0x101   : > { %725 = vmatpush.msra.mxu0 %v1856_v32  ;;  %745 = vmatpush.msra.mxu1 %v1858_v33 }
 0x102   : > { %761 = vmatpush.msra.mxu2 %v1865_v35  ;;  %785 = vmatpush.msra.mxu3 %v1863_v34 }
 0x103   : > { %726 = vmatpush.msra.mxu0 %v1868_v36  ;;  %746 = vmatpush.msra.mxu1 %v1870_v37 }
 0x104   : > { %762 = vmatpush.msra.mxu2 %v1877_v39  ;;  %786 = vmatpush.msra.mxu3 %v1875_v38 }
 0x105   : > { %727 = vmatpush.msra.mxu0 %v1880_v40  ;;  %747 = vmatpush.msra.mxu1 %v1882_v41 }
 0x106   : > { %763 = vmatpush.msra.mxu2 %v1893_v44  ;;  %787 = vmatpush.msra.mxu3 %v1887_v42 }
 0x107   : > { %864 = vmatpush.msrb.mxu0 %v2195_v43  ;;  %884 = vmatpush.msrb.mxu1 %v1719_v49 }
 0x108   : > { %764 = vmatpush.msra.mxu2 %v1896_v45  ;;  %924 = vmatpush.msrb.mxu3 %v1721_v50 }
 0x109   : > { %865 = vmatpush.msrb.mxu0 %v1725_v51  ;;  %885 = vmatpush.msrb.mxu1 %v1727_v52 }
 0x10a   : > { %765 = vmatpush.msra.mxu2 %v1900_v46  ;;  %925 = vmatpush.msrb.mxu3 %v1729_v53 }
 0x10b   : > { %866 = vmatpush.msrb.mxu0 %v1732_v54  ;;  %886 = vmatpush.msrb.mxu1 %v1734_v55 }
 0x10c   : > { %766 = vmatpush.msra.mxu2 %v1906_v47  ;;  %926 = vmatpush.msrb.mxu3 %v1738_v56 }
 0x10d   : > { %867 = vmatpush.msrb.mxu0 %v1741_v57  ;;  %887 = vmatpush.msrb.mxu1 %v1743_v58 }
 0x10e   : > { %767 = vmatpush.msra.mxu2 %v1912_v48  ;;  %927 = vmatpush.msrb.mxu3 %v1747_v59 }
 0x10f   : > { %868 = vmatpush.msrb.mxu0 %v1750_v60  ;;  %888 = vmatpush.msrb.mxu1 %v1752_v61 }
 0x110   : > { %904 = vmatpush.msrb.mxu2 %v1763_v1  ;;  %928 = vmatpush.msrb.mxu3 %v1756_v62 }
 0x111   : > { %869 = vmatpush.msrb.mxu0 %v1759_v63  ;;  %889 = vmatpush.msrb.mxu1 %v1761_v0 }
 0x112   : > { %905 = vmatpush.msrb.mxu2 %v1769_v3  ;;  %929 = vmatpush.msrb.mxu3 %v1767_v2 }
 0x113   : > { %870 = vmatpush.msrb.mxu0 %v1772_v4  ;;  %890 = vmatpush.msrb.mxu1 %v1774_v5 }
 0x114   : > { %906 = vmatpush.msrb.mxu2 %v1781_v7  ;;  %930 = vmatpush.msrb.mxu3 %v1779_v6 }
 0x115   : > { %871 = vmatpush.msrb.mxu0 %v1784_v8  ;;  %891 = vmatpush.msrb.mxu1 %v1786_v9 }
 0x116   : > { %907 = vmatpush.msrb.mxu2 %v1793_v11  ;;  %931 = vmatpush.msrb.mxu3 %v1791_v10 }
 0x117   : > { %872 = vmatpush.msrb.mxu0 %v1796_v12  ;;  %892 = vmatpush.msrb.mxu1 %v1798_v13 }
 0x118   : > { %908 = vmatpush.msrb.mxu2 %v1805_v15  ;;  %932 = vmatpush.msrb.mxu3 %v1803_v14 }
 0x119   : > { %873 = vmatpush.msrb.mxu0 %v1808_v16  ;;  %893 = vmatpush.msrb.mxu1 %v1810_v17 }
 0x11a   : > { %909 = vmatpush.msrb.mxu2 %v1817_v19  ;;  %933 = vmatpush.msrb.mxu3 %v1815_v18 }
 0x11b   : > { %874 = vmatpush.msrb.mxu0 %v1820_v20  ;;  %894 = vmatpush.msrb.mxu1 %v1822_v21 }
 0x11c   : > { %910 = vmatpush.msrb.mxu2 %v1829_v23  ;;  %934 = vmatpush.msrb.mxu3 %v1827_v22 }
 0x11d   : > { %875 = vmatpush.msrb.mxu0 %v1832_v24  ;;  %895 = vmatpush.msrb.mxu1 %v1834_v25 }
 0x11e   : > { %911 = vmatpush.msrb.mxu2 %v1841_v27  ;;  %935 = vmatpush.msrb.mxu3 %v1839_v26 }
 0x11f   : > { %876 = vmatpush.msrb.mxu0 %v1844_v28  ;;  %896 = vmatpush.msrb.mxu1 %v1846_v29 }
 0x120   : > { %912 = vmatpush.msrb.mxu2 %v1853_v31  ;;  %936 = vmatpush.msrb.mxu3 %v1851_v30 }
 0x121   : > { %877 = vmatpush.msrb.mxu0 %v1856_v32  ;;  %897 = vmatpush.msrb.mxu1 %v1858_v33 }
 0x122   : > { %913 = vmatpush.msrb.mxu2 %v1865_v35  ;;  %937 = vmatpush.msrb.mxu3 %v1863_v34 }
 0x123   : > { %878 = vmatpush.msrb.mxu0 %v1868_v36  ;;  %898 = vmatpush.msrb.mxu1 %v1870_v37  ;;  %v492_v36 = vld [vmem:[#allocation2 + $0x30] sm:$0xff]  ;;  %v493_v37 = vld [vmem:[#allocation2] sm:$0xff] }
 0x124   : > { %914 = vmatpush.msrb.mxu2 %v1877_v39  ;;  %938 = vmatpush.msrb.mxu3 %v1875_v38 }
 0x125   : > { %879 = vmatpush.msrb.mxu0 %v1880_v40  ;;  %899 = vmatpush.msrb.mxu1 %v1882_v41  ;;  %v495_v41 = vld [vmem:[#allocation2 + $0x18] sm:$0xff] }
 0x126   : > { %915 = vmatpush.msrb.mxu2 %v1893_v44  ;;  %939 = vmatpush.msrb.mxu3 %v1887_v42 }
 0x128   : > { %916 = vmatpush.msrb.mxu2 %v1896_v45 }
 0x12a   : > { %917 = vmatpush.msrb.mxu2 %v1900_v46 }
 0x12c   : > { %918 = vmatpush.msrb.mxu2 %v1906_v47 }
 0x12e   : > { %919 = vmatpush.msrb.mxu2 %v1912_v48  ;;  %v494_v48 = vld [vmem:[#allocation2 + $0x58] sm:$0xff] }
 0x162   : > { %v577_v34 = vpop.f32.mrf.mxu0 }
 0x163   : > { %v640_v38 = vadd.f32 %v577_v34, %v492_v36  ;;  %v597_v33 = vpop.f32.mrf.mxu1 }
 0x164   : > { %v641_v32 = vadd.f32 %v597_v33, %v493_v37 }
 0x165   : > { %v1330_v30 = vmul.f32 -1.442695, %v640_v38 }
 0x166   : > { %v1331_v40 = vmul.f32 -1.442695, %v641_v32 }
 0x167   : > { %1404 = vpow2.f32 %v1330_v30 }
 0x168   : > { %1406 = vpow2.f32 %v1331_v40 }
 0x169   : > { %v637_v42 = vpop.f32.mrf.mxu3 }
 0x16a   : > { %v643_v29 = vadd.f32 %v637_v42, %v495_v41 }
 0x16c   : > { %v1332_v45 = vmul.f32 -1.442695, %v643_v29 }
 0x16d   : > { %v1405_v28 = vpop.eup %1404 }
 0x16e   : > { %v1407_v46 = vpop.eup %1406  ;;  %v647_v26 = vadd.f32 1.0, %v1405_v28  ;;  %1408 = vpow2.f32 %v1332_v45 }
 0x16f   : > { %v666_v47 = vadd.f32 1.0, %v1407_v46 }
 0x170   : > { %1410 = vrcp.f32 %v647_v26  ;;  %v659_v41 = vand.u32 2147483648, %v647_v26  ;;  %v657_v45 = vand.u32 2147483647, %v647_v26  ;;  %vm653_vm4 = vweird.f32 %v647_v26 }
 0x171   : > { %1412 = vrcp.f32 %v666_v47  ;;  %v617_v44 = vpop.f32.mrf.mxu2  ;;  %v678_v42 = vand.u32 2147483648, %v666_v47  ;;  %v676_v25 = vand.u32 2147483647, %v666_v47  ;;  %vm672_vm5 = vweird.f32 %v666_v47 }
 0x172   : > { %v642_v36 = vadd.f32 %v617_v44, %v494_v48  ;;  %vm658_vm8 = vcmp.eq.f32.partialorder %v657_v45, 8.507059e+37 }
 0x173   : > { %vm677_vm9 = vcmp.eq.f32.partialorder %v676_v25, 8.507059e+37 }
 0x174   : > { %v1409_v34 = vpop.eup %1408 }
 0x175   : > { %v686_v33 = vadd.f32 1.0, %v1409_v34  ;;  %v660_v34 = vor.u32 1.1754944e-38, %v659_v41 }
 0x176   : > { %v1411_v37 = vpop.eup %1410 }
 0x177   : > { %v1413_v32 = vpop.eup %1412  ;;  %v649_v30 = vmul.f32 %v1411_v37, %v647_v26  ;;  %1414 = vrcp.f32 %v686_v33  ;;  %vm654_vm2 = vweird.f32 %v1411_v37  ;;  %v698_v41 = vand.u32 2147483648, %v686_v33 }
 0x178   : > { %v668_v38 = vmul.f32 %v1413_v32, %v666_v47  ;;  %1416 = vtanh.f32 %v642_v36  ;;  %vm673_vm3 = vweird.f32 %v1413_v32  ;;  %vm655_vm6 = vmor %vm653_vm4, %vm654_vm2  ;;  %v679_v36 = vor.u32 1.1754944e-38, %v678_v42 }
 0x179   : > { %v650_v40 = vsub.f32 1.0, %v649_v30  ;;  %vm674_vm7 = vmor %vm672_vm5, %vm673_vm3  ;;  %v491_v30 = vld [vmem:[#allocation4] sm:$0xff]  ;;  %vm692_vm11 = vweird.f32 %v686_v33  ;;  %v696_v42 = vand.u32 2147483647, %v686_v33 }
 0x17a   : > { %v669_v29 = vsub.f32 1.0, %v668_v38 }
 0x17b   : > { %v651_v28 = vmul.f32 %v1411_v37, %v650_v40  ;;  %vm697_vm13 = vcmp.eq.f32.partialorder %v696_v42, 8.507059e+37 }
 0x17c   : > { %v670_v46 = vmul.f32 %v1413_v32, %v669_v29 }
 0x17d   : > { %v1415_v24 = vpop.eup %1414  ;;  %v652_v22 = vadd.f32 %v1411_v37, %v651_v28 }
 0x17e   : > { %v1417_v48 = vpop.eup %1416  ;;  %v688_v44 = vmul.f32 %v1415_v24, %v686_v33  ;;  %v671_v39 = vadd.f32 %v1413_v32, %v670_v46  ;;  %vm693_vm10 = vweird.f32 %v1415_v24 }
 0x17f   : > { %v656_v38 = vsel %vm655_vm6, %v1411_v37, %v652_v22  ;;  %vm694_vm12 = vmor %vm692_vm11, %vm693_vm10  ;;  %v699_v37 = vor.u32 1.1754944e-38, %v698_v41 }
 0x180   : > { %v689_v40 = vsub.f32 1.0, %v688_v44  ;;  %v661_v21 = vsel %vm658_vm8, %v660_v34, %v656_v38  ;;  %v675_v20 = vsel %vm674_vm7, %v1413_v32, %v671_v39 }
 0x181   : > { %v680_v29 = vsel %vm677_vm9, %v679_v36, %v675_v20  ;;  %v703_v18 = vmul.f32 %v1417_v48, %v661_v21 }
 0x182   : > { %v702_v35 = vmul.f32 %v680_v29, %v491_v30  ;;  %v690_v28 = vmul.f32 %v1415_v24, %v689_v40 }
 0x184   : > { %v2037_v26 = vadd.f32 %v703_v18, %v702_v35  ;;  %v691_v47 = vadd.f32 %v1415_v24, %v690_v28 }
 0x186   : > { %1418 = vtanh.f32 %v2037_v26  ;;  %v695_v22 = vsel %vm694_vm12, %v1415_v24, %v691_v47 }
 0x187   : > { %v700_v39 = vsel %vm697_vm13, %v699_v37, %v695_v22 }
 0x18c   : > { %v1419_v45 = vpop.eup %1418 }
 0x18d   : > { %v706_v25 = vmul.f32 %v1419_v45, %v700_v39 }
 0x18f   : > { %728 = vmatmul.f32.vlgmr.msra.gmra.mxu0 %v706_v25  ;;  %748 = vmatmul.f32.vlgmr.msra.gmra.mxu1 %v706_v25 }
 0x190   : > { %768 = vmatmul.f32.vlgmr.msra.gmra.mxu2 %v706_v25  ;;  %788 = vmatmul.f32.vlgmr.msra.gmra.mxu3 %v706_v25 }
 0x191   : > { %1016 = vmatpush.msra.mxu0 %v2195_v43  ;;  %1036 = vmatpush.msra.mxu1 %v1719_v49  ;;  %v2196_v49 = vld [vmem:[#allocation28_spill] sm:$0xff] }
 0x192   : > { %1056 = vmatpush.msra.mxu2 %v1763_v1  ;;  %1076 = vmatpush.msra.mxu3 %v1721_v50  ;;  %v2197_v50 = vld [vmem:[#allocation15_spill] sm:$0xff]  ;;  %v2212_v1 = vld [vmem:[#allocation38_spill] sm:$0xff]  ;;  %v710_v43 = vld [vmem:[#allocation2 + $0x8] sm:$0xff] }
 0x193   : > { %1017 = vmatpush.msra.mxu0 %v1725_v51  ;;  %1037 = vmatpush.msra.mxu1 %v1727_v52  ;;  %v2198_v51 = vld [vmem:[#allocation16_spill] sm:$0xff]  ;;  %v2199_v52 = vld [vmem:[#allocation17_spill] sm:$0xff] }
 0x194   : > { %1057 = vmatpush.msra.mxu2 %v1769_v3  ;;  %1077 = vmatpush.msra.mxu3 %v1729_v53  ;;  %v2200_v53 = vld [vmem:[#allocation32_spill] sm:$0xff]  ;;  %v2214_v3 = vld [vmem:[#allocation29_spill] sm:$0xff] }
 0x195   : > { %1018 = vmatpush.msra.mxu0 %v1732_v54  ;;  %1038 = vmatpush.msra.mxu1 %v1734_v55  ;;  %v2201_v54 = vld [vmem:[#allocation18_spill] sm:$0xff]  ;;  %v2202_v55 = vld [vmem:[#allocation19_spill] sm:$0xff] }
 0x196   : > { %1058 = vmatpush.msra.mxu2 %v1781_v7  ;;  %1078 = vmatpush.msra.mxu3 %v1738_v56  ;;  %v2203_v56 = vld [vmem:[#allocation20_spill] sm:$0xff]  ;;  %v2218_v7 = vld [vmem:[#allocation33_spill] sm:$0xff] }
 0x197   : > { %1019 = vmatpush.msra.mxu0 %v1741_v57  ;;  %1039 = vmatpush.msra.mxu1 %v1743_v58  ;;  %v2204_v57 = vld [vmem:[#allocation36_spill] sm:$0xff]  ;;  %v2205_v58 = vld [vmem:[#allocation21_spill] sm:$0xff] }
 0x198   : > { %1059 = vmatpush.msra.mxu2 %v1793_v11  ;;  %1079 = vmatpush.msra.mxu3 %v1747_v59  ;;  %v2206_v59 = vld [vmem:[#allocation22_spill] sm:$0xff]  ;;  %v708_v11 = vld [vmem:[#allocation2 + $0x50] sm:$0xff] }
 0x199   : > { %1020 = vmatpush.msra.mxu0 %v1750_v60  ;;  %1040 = vmatpush.msra.mxu1 %v1752_v61  ;;  %v2207_v60 = vld [vmem:[#allocation23_spill] sm:$0xff]  ;;  %v2208_v61 = vld [vmem:[#allocation37_spill] sm:$0xff] }
 0x19a   : > { %1060 = vmatpush.msra.mxu2 %v1805_v15  ;;  %1080 = vmatpush.msra.mxu3 %v1756_v62  ;;  %v2209_v62 = vld [vmem:[#allocation24_spill] sm:$0xff] }
 0x19b   : > { %1021 = vmatpush.msra.mxu0 %v1759_v63  ;;  %1041 = vmatpush.msra.mxu1 %v1761_v0  ;;  %v2210_v63 = vld [vmem:[#allocation25_spill] sm:$0xff]  ;;  %v2211_v0 = vld [vmem:[#allocation26_spill] sm:$0xff] }
 0x19c   : > { %1061 = vmatpush.msra.mxu2 %v1817_v19  ;;  %1081 = vmatpush.msra.mxu3 %v1767_v2  ;;  %v2213_v2 = vld [vmem:[#allocation27_spill] sm:$0xff]  ;;  %v711_v19 = vld [vmem:[#allocation2 + $0x48] sm:$0xff] }
 0x19d   : > { %1022 = vmatpush.msra.mxu0 %v1772_v4  ;;  %1042 = vmatpush.msra.mxu1 %v1774_v5  ;;  %v2215_v4 = vld [vmem:[#allocation30_spill] sm:$0xff]  ;;  %v2216_v5 = vld [vmem:[#allocation39_spill] sm:$0xff] }
 0x19e   : > { %1062 = vmatpush.msra.mxu2 %v1829_v23  ;;  %1082 = vmatpush.msra.mxu3 %v1779_v6  ;;  %v2217_v6 = vld [vmem:[#allocation31_spill] sm:$0xff] }
 0x19f   : > { %1023 = vmatpush.msra.mxu0 %v1784_v8  ;;  %1043 = vmatpush.msra.mxu1 %v1786_v9  ;;  %v2219_v8 = vld [vmem:[#allocation34_spill] sm:$0xff]  ;;  %v2220_v9 = vld [vmem:[#allocation40_spill] sm:$0xff] }
 0x1a0   : > { %1063 = vmatpush.msra.mxu2 %v1841_v27  ;;  %1083 = vmatpush.msra.mxu3 %v1791_v10  ;;  %v2221_v10 = vld [vmem:[#allocation35_spill] sm:$0xff] }
 0x1a1   : > { %1024 = vmatpush.msra.mxu0 %v1796_v12  ;;  %1044 = vmatpush.msra.mxu1 %v1798_v13  ;;  %v709_v12 = vld [vmem:[#allocation2 + $0x68] sm:$0xff] }
 0x1a2   : > { %1064 = vmatpush.msra.mxu2 %v1853_v31  ;;  %1084 = vmatpush.msra.mxu3 %v1803_v14 }
 0x1a3   : > { %1025 = vmatpush.msra.mxu0 %v1808_v16  ;;  %1045 = vmatpush.msra.mxu1 %v1810_v17 }
 0x1a4   : > { %1065 = vmatpush.msra.mxu2 %v2196_v49  ;;  %1085 = vmatpush.msra.mxu3 %v2197_v50 }
 0x1a5   : > { %1026 = vmatpush.msra.mxu0 %v2198_v51  ;;  %1046 = vmatpush.msra.mxu1 %v2199_v52 }
 0x1a6   : > { %1066 = vmatpush.msra.mxu2 %v2200_v53  ;;  %1086 = vmatpush.msra.mxu3 %v2201_v54 }
 0x1a7   : > { %1027 = vmatpush.msra.mxu0 %v2202_v55  ;;  %1047 = vmatpush.msra.mxu1 %v2203_v56 }
 0x1a8   : > { %1067 = vmatpush.msra.mxu2 %v2204_v57  ;;  %1087 = vmatpush.msra.mxu3 %v2205_v58 }
 0x1a9   : > { %1028 = vmatpush.msra.mxu0 %v2206_v59  ;;  %1048 = vmatpush.msra.mxu1 %v2207_v60 }
 0x1aa   : > { %1068 = vmatpush.msra.mxu2 %v2208_v61  ;;  %1088 = vmatpush.msra.mxu3 %v2209_v62 }
 0x1ab   : > { %1029 = vmatpush.msra.mxu0 %v2210_v63  ;;  %1049 = vmatpush.msra.mxu1 %v2211_v0 }
 0x1ac   : > { %1069 = vmatpush.msra.mxu2 %v2212_v1  ;;  %1089 = vmatpush.msra.mxu3 %v2213_v2 }
 0x1ad   : > { %1030 = vmatpush.msra.mxu0 %v2214_v3  ;;  %1050 = vmatpush.msra.mxu1 %v2215_v4 }
 0x1ae   : > { %1070 = vmatpush.msra.mxu2 %v2216_v5  ;;  %1090 = vmatpush.msra.mxu3 %v2217_v6  ;;  %v861_v5 = vld [vmem:[#allocation2 + $0x20] sm:$0xff] }
 0x1af   : > { %1031 = vmatpush.msra.mxu0 %v2218_v7  ;;  %1051 = vmatpush.msra.mxu1 %v2219_v8 }
 0x1b0   : > { %1071 = vmatpush.msra.mxu2 %v2220_v9  ;;  %1091 = vmatpush.msra.mxu3 %v2221_v10 }
 0x20c   : > { %v729_v13 = vpop.f32.mrf.mxu0  ;;  %v749_v14 = vpop.f32.mrf.mxu1 }
 0x20d   : > { %v792_v15 = vadd.f32 %v729_v13, %v708_v11  ;;  %v793_v16 = vadd.f32 %v749_v14, %v709_v12  ;;  %v863_v12 = vld [vmem:[#allocation2 + $0x38] sm:$0xff] }
 0x20f   : > { %v1333_v17 = vmul.f32 -1.442695, %v792_v15  ;;  %v1334_v18 = vmul.f32 -1.442695, %v793_v16 }
 0x211   : > { %1420 = vpow2.f32 %v1333_v17 }
 0x212   : > { %1422 = vpow2.f32 %v1334_v18 }
 0x213   : > { %v789_v20 = vpop.f32.mrf.mxu3  ;;  %v769_v33 = vpop.f32.mrf.mxu2 }
 0x214   : > { %v795_v21 = vadd.f32 %v789_v20, %v711_v19  ;;  %v794_v44 = vadd.f32 %v769_v33, %v710_v43  ;;  %v862_v20 = vld [vmem:[#allocation2 + $0x10] sm:$0xff] }
 0x216   : > { %v1335_v23 = vmul.f32 -1.442695, %v795_v21 }
 0x217   : > { %v1421_v24 = vpop.eup %1420 }
 0x218   : > { %v1423_v27 = vpop.eup %1422  ;;  %v799_v31 = vadd.f32 1.0, %v1421_v24  ;;  %1424 = vpow2.f32 %v1335_v23 }
 0x219   : > { %v818_v35 = vadd.f32 1.0, %v1423_v27 }
 0x21a   : > { %1426 = vrcp.f32 %v799_v31  ;;  %v811_v29 = vand.u32 2147483648, %v799_v31  ;;  %v809_v41 = vand.u32 2147483647, %v799_v31  ;;  %vm805_vm0 = vweird.f32 %v799_v31 }
 0x21b   : > { %1428 = vrcp.f32 %v818_v35  ;;  %v830_v28 = vand.u32 2147483648, %v818_v35  ;;  %v828_v22 = vand.u32 2147483647, %v818_v35  ;;  %vm824_vm1 = vweird.f32 %v818_v35 }
 0x21c   : > { %v812_v39 = vor.u32 1.1754944e-38, %v811_v29  ;;  %vm810_vm4 = vcmp.eq.f32.partialorder %v809_v41, 8.507059e+37 }
 0x21d   : > { %v831_v50 = vor.u32 1.1754944e-38, %v830_v28  ;;  %vm829_vm5 = vcmp.eq.f32.partialorder %v828_v22, 8.507059e+37 }
 0x21e   : > { %v1425_v32 = vpop.eup %1424 }
 0x21f   : > { %v838_v46 = vadd.f32 1.0, %v1425_v32 }
 0x220   : > { %v1427_v48 = vpop.eup %1426 }
 0x221   : > { %v1429_v34 = vpop.eup %1428  ;;  %v801_v36 = vmul.f32 %v1427_v48, %v799_v31  ;;  %1430 = vrcp.f32 %v838_v46  ;;  %vm806_vm14 = vweird.f32 %v1427_v48  ;;  %v850_v62 = vand.u32 2147483648, %v838_v46 }
 0x222   : > { %v820_v30 = vmul.f32 %v1429_v34, %v818_v35  ;;  %1432 = vtanh.f32 %v794_v44  ;;  %vm825_vm15 = vweird.f32 %v1429_v34  ;;  %vm807_vm2 = vmor %vm805_vm0, %vm806_vm14  ;;  %vm844_vm7 = vweird.f32 %v838_v46 }
 0x223   : > { %v802_v38 = vsub.f32 1.0, %v801_v36  ;;  %vm826_vm3 = vmor %vm824_vm1, %vm825_vm15  ;;  %v848_v63 = vand.u32 2147483647, %v838_v46  ;;  %v851_v1 = vor.u32 1.1754944e-38, %v850_v62 }
 0x224   : > { %v821_v40 = vsub.f32 1.0, %v820_v30 }
 0x225   : > { %v803_v47 = vmul.f32 %v1427_v48, %v802_v38  ;;  %vm849_vm9 = vcmp.eq.f32.partialorder %v848_v63, 8.507059e+37  ;;  %v1013_v63 = vld [vmem:[#allocation2 + $0x70] sm:$0xff] }
 0x226   : > { %v822_v42 = vmul.f32 %v1429_v34, %v821_v40 }
 0x227   : > { %v1431_v37 = vpop.eup %1430  ;;  %v804_v45 = vadd.f32 %v1427_v48, %v803_v47 }
 0x228   : > { %v823_v25 = vadd.f32 %v1429_v34, %v822_v42  ;;  %v840_v49 = vmul.f32 %v1431_v37, %v838_v46  ;;  %v1433_v52 = vpop.eup %1432  ;;  %vm845_vm6 = vweird.f32 %v1431_v37 }
 0x229   : > { %v808_v51 = vsel %vm807_vm2, %v1427_v48, %v804_v45  ;;  %vm846_vm8 = vmor %vm844_vm7, %vm845_vm6 }
 0x22a   : > { %v813_v53 = vsel %vm810_vm4, %v812_v39, %v808_v51  ;;  %v827_v54 = vsel %vm826_vm3, %v1429_v34, %v823_v25  ;;  %v841_v55 = vsub.f32 1.0, %v840_v49 }
 0x22b   : > { %v832_v56 = vsel %vm829_vm5, %v831_v50, %v827_v54  ;;  %v855_v57 = vmul.f32 %v1433_v52, %v813_v53 }
 0x22c   : > { %v854_v58 = vmul.f32 %v832_v56, %v2037_v26  ;;  %v842_v59 = vmul.f32 %v1431_v37, %v841_v55  ;;  %v860_v26 = vld [vmem:[#allocation2 + $0x40] sm:$0xff] }
 0x22e   : > { %v2105_v60 = vadd.f32 %v855_v57, %v854_v58  ;;  %v843_v61 = vadd.f32 %v1431_v37, %v842_v59 }
 0x230   : > { %1434 = vtanh.f32 %v2105_v60  ;;  %v847_v0 = vsel %vm846_vm8, %v1431_v37, %v843_v61 }
 0x231   : > { %v852_v3 = vsel %vm849_vm9, %v851_v1, %v847_v0 }
 0x236   : > { %v1435_v2 = vpop.eup %1434 }
 0x237   : > { %v858_v4 = vmul.f32 %v1435_v2, %v852_v3 }
 0x239   : > { %880 = vmatmul.f32.vlgmr.msrb.gmra.mxu0 %v858_v4  ;;  %900 = vmatmul.f32.vlgmr.msrb.gmra.mxu1 %v858_v4 }
 0x23a   : > { %920 = vmatmul.f32.vlgmr.msrb.gmra.mxu2 %v858_v4  ;;  %940 = vmatmul.f32.vlgmr.msrb.gmra.mxu3 %v858_v4 }
 0x2b6   : > { %v881_v6 = vpop.f32.mrf.mxu0  ;;  %v901_v7 = vpop.f32.mrf.mxu1 }
 0x2b7   : > { %v944_v8 = vadd.f32 %v881_v6, %v860_v26  ;;  %v945_v9 = vadd.f32 %v901_v7, %v861_v5  ;;  %v1015_v5 = vld [vmem:[#allocation2 + $0x28] sm:$0xff] }
 0x2b9   : > { %v1336_v10 = vmul.f32 -1.442695, %v944_v8  ;;  %v1337_v11 = vmul.f32 -1.442695, %v945_v9 }
 0x2bb   : > { %1436 = vpow2.f32 %v1336_v10 }
 0x2bc   : > { %1438 = vpow2.f32 %v1337_v11 }
 0x2bd   : > { %v941_v13 = vpop.f32.mrf.mxu3  ;;  %v921_v21 = vpop.f32.mrf.mxu2 }
 0x2be   : > { %v947_v14 = vadd.f32 %v941_v13, %v863_v12  ;;  %v946_v31 = vadd.f32 %v921_v21, %v862_v20  ;;  %v1014_v13 = vld [vmem:[#allocation2 + $0x78] sm:$0xff] }
 0x2c0   : > { %v1338_v15 = vmul.f32 -1.442695, %v947_v14 }
 0x2c1   : > { %v1437_v16 = vpop.eup %1436 }
 0x2c2   : > { %v1439_v17 = vpop.eup %1438  ;;  %v951_v18 = vadd.f32 1.0, %v1437_v16  ;;  %1440 = vpow2.f32 %v1338_v15 }
 0x2c3   : > { %v970_v19 = vadd.f32 1.0, %v1439_v17 }
 0x2c4   : > { %1442 = vrcp.f32 %v951_v18  ;;  %v963_v48 = vand.u32 2147483648, %v951_v18  ;;  %v961_v36 = vand.u32 2147483647, %v951_v18  ;;  %vm957_vm12 = vweird.f32 %v951_v18 }
 0x2c5   : > { %1444 = vrcp.f32 %v970_v19  ;;  %v982_v44 = vand.u32 2147483648, %v970_v19  ;;  %v980_v38 = vand.u32 2147483647, %v970_v19  ;;  %vm976_vm13 = vweird.f32 %v970_v19 }
 0x2c6   : > { %v964_v28 = vor.u32 1.1754944e-38, %v963_v48  ;;  %vm962_vm0 = vcmp.eq.f32.partialorder %v961_v36, 8.507059e+37 }
 0x2c7   : > { %v983_v42 = vor.u32 1.1754944e-38, %v982_v44  ;;  %vm981_vm1 = vcmp.eq.f32.partialorder %v980_v38, 8.507059e+37 }
 0x2c8   : > { %v1441_v23 = vpop.eup %1440 }
 0x2c9   : > { %v990_v24 = vadd.f32 1.0, %v1441_v23 }
 0x2ca   : > { %v1443_v27 = vpop.eup %1442 }
 0x2cb   : > { %v1445_v35 = vpop.eup %1444  ;;  %v953_v43 = vmul.f32 %v1443_v27, %v951_v18  ;;  %1446 = vrcp.f32 %v990_v24  ;;  %vm958_vm10 = vweird.f32 %v1443_v27  ;;  %v1002_v55 = vand.u32 2147483648, %v990_v24 }
 0x2cc   : > { %v972_v33 = vmul.f32 %v1445_v35, %v970_v19  ;;  %1448 = vtanh.f32 %v946_v31  ;;  %vm977_vm11 = vweird.f32 %v1445_v35  ;;  %vm959_vm14 = vmor %vm957_vm12, %vm958_vm10  ;;  %vm996_vm3 = vweird.f32 %v990_v24 }
 0x2cd   : > { %v954_v32 = vsub.f32 1.0, %v953_v43  ;;  %vm978_vm15 = vmor %vm976_vm13, %vm977_vm11  ;;  %v1000_v56 = vand.u32 2147483647, %v990_v24  ;;  %v1003_v58 = vor.u32 1.1754944e-38, %v1002_v55 }
 0x2ce   : > { %v973_v46 = vsub.f32 1.0, %v972_v33 }
 0x2cf   : > { %v955_v34 = vmul.f32 %v1443_v27, %v954_v32  ;;  %vm1001_vm5 = vcmp.eq.f32.partialorder %v1000_v56, 8.507059e+37 }
 0x2d0   : > { %v974_v30 = vmul.f32 %v1445_v35, %v973_v46 }
 0x2d1   : > { %v1447_v40 = vpop.eup %1446  ;;  %v956_v29 = vadd.f32 %v1443_v27, %v955_v34 }
 0x2d2   : > { %v975_v47 = vadd.f32 %v1445_v35, %v974_v30  ;;  %v992_v41 = vmul.f32 %v1447_v40, %v990_v24  ;;  %v1449_v37 = vpop.eup %1448  ;;  %vm997_vm2 = vweird.f32 %v1447_v40 }
 0x2d3   : > { %v960_v22 = vsel %vm959_vm14, %v1443_v27, %v956_v29  ;;  %vm998_vm4 = vmor %vm996_vm3, %vm997_vm2 }
 0x2d4   : > { %v965_v45 = vsel %vm962_vm0, %v964_v28, %v960_v22  ;;  %v979_v39 = vsel %vm978_vm15, %v1445_v35, %v975_v47  ;;  %v993_v25 = vsub.f32 1.0, %v992_v41 }
 0x2d5   : > { %v984_v49 = vsel %vm981_vm1, %v983_v42, %v979_v39  ;;  %v1007_v50 = vmul.f32 %v1449_v37, %v965_v45 }
 0x2d6   : > { %v1006_v51 = vmul.f32 %v984_v49, %v2105_v60  ;;  %v994_v52 = vmul.f32 %v1447_v40, %v993_v25  ;;  %v1012_v60 = vld [vmem:[#allocation2 + $0x60] sm:$0xff] }
 0x2d8   : > { %v2109_v53 = vadd.f32 %v1007_v50, %v1006_v51  ;;  %v995_v54 = vadd.f32 %v1447_v40, %v994_v52 }
 0x2da   : > { %1450 = vtanh.f32 %v2109_v53  ;;  %v999_v57 = vsel %vm998_vm4, %v1447_v40, %v995_v54 }
 0x2db   : > { %v1004_v61 = vsel %vm1001_vm5, %v1003_v58, %v999_v57 }
 0x2e0   : > { %v1451_v59 = vpop.eup %1450 }
 0x2e1   : > { %v1010_v62 = vmul.f32 %v1451_v59, %v1004_v61 }
 0x2e3   : > { %1032 = vmatmul.f32.vlgmr.msra.gmra.mxu0 %v1010_v62  ;;  %1052 = vmatmul.f32.vlgmr.msra.gmra.mxu1 %v1010_v62 }
 0x2e4   : > { %1072 = vmatmul.f32.vlgmr.msra.gmra.mxu2 %v1010_v62  ;;  %1092 = vmatmul.f32.vlgmr.msra.gmra.mxu3 %v1010_v62 }
 0x360   : > { %v1033_v0 = vpop.f32.mrf.mxu0  ;;  %v1053_v1 = vpop.f32.mrf.mxu1 }
 0x361   : > { %v1096_v2 = vadd.f32 %v1033_v0, %v1012_v60  ;;  %v1097_v3 = vadd.f32 %v1053_v1, %v1013_v63 }
 0x363   : > { %v1339_v4 = vmul.f32 -1.442695, %v1096_v2  ;;  %v1340_v26 = vmul.f32 -1.442695, %v1097_v3 }
 0x365   : > { %1452 = vpow2.f32 %v1339_v4 }
 0x366   : > { %1454 = vpow2.f32 %v1340_v26 }
 0x367   : > { %v1093_v6 = vpop.f32.mrf.mxu3  ;;  %v1073_v14 = vpop.f32.mrf.mxu2 }
 0x368   : > { %v1099_v7 = vadd.f32 %v1093_v6, %v1015_v5  ;;  %v1098_v18 = vadd.f32 %v1073_v14, %v1014_v13 }
 0x36a   : > { %v1341_v8 = vmul.f32 -1.442695, %v1099_v7 }
 0x36b   : > { %v1453_v9 = vpop.eup %1452 }
 0x36c   : > { %v1455_v10 = vpop.eup %1454  ;;  %v1103_v11 = vadd.f32 1.0, %v1453_v9  ;;  %1456 = vpow2.f32 %v1341_v8 }
 0x36d   : > { %v1122_v12 = vadd.f32 1.0, %v1455_v10 }
 0x36e   : > { %1458 = vrcp.f32 %v1103_v11  ;;  %v1115_v27 = vand.u32 2147483648, %v1103_v11  ;;  %v1113_v43 = vand.u32 2147483647, %v1103_v11  ;;  %vm1109_vm8 = vweird.f32 %v1103_v11 }
 0x36f   : > { %1460 = vrcp.f32 %v1122_v12  ;;  %v1134_v31 = vand.u32 2147483648, %v1122_v12  ;;  %v1132_v32 = vand.u32 2147483647, %v1122_v12  ;;  %vm1128_vm9 = vweird.f32 %v1122_v12 }
 0x370   : > { %v1116_v44 = vor.u32 1.1754944e-38, %v1115_v27  ;;  %vm1114_vm12 = vcmp.eq.f32.partialorder %v1113_v43, 8.507059e+37 }
 0x371   : > { %v1135_v30 = vor.u32 1.1754944e-38, %v1134_v31  ;;  %vm1133_vm13 = vcmp.eq.f32.partialorder %v1132_v32, 8.507059e+37 }
 0x372   : > { %v1457_v15 = vpop.eup %1456 }
 0x373   : > { %v1142_v16 = vadd.f32 1.0, %v1457_v15 }
 0x374   : > { %v1459_v17 = vpop.eup %1458 }
 0x375   : > { %v1461_v19 = vpop.eup %1460  ;;  %v1105_v20 = vmul.f32 %v1459_v17, %v1103_v11  ;;  %1462 = vrcp.f32 %v1142_v16  ;;  %vm1110_vm6 = vweird.f32 %v1459_v17  ;;  %v1154_v25 = vand.u32 2147483648, %v1142_v16 }
 0x376   : > { %v1124_v21 = vmul.f32 %v1461_v19, %v1122_v12  ;;  %1464 = vtanh.f32 %v1098_v18  ;;  %vm1129_vm7 = vweird.f32 %v1461_v19  ;;  %vm1111_vm10 = vmor %vm1109_vm8, %vm1110_vm6  ;;  %vm1148_vm15 = vweird.f32 %v1142_v16 }
 0x377   : > { %v1106_v23 = vsub.f32 1.0, %v1105_v20  ;;  %vm1130_vm11 = vmor %vm1128_vm9, %vm1129_vm7  ;;  %v1152_v49 = vand.u32 2147483647, %v1142_v16  ;;  %v1155_v51 = vor.u32 1.1754944e-38, %v1154_v25 }
 0x378   : > { %v1125_v24 = vsub.f32 1.0, %v1124_v21 }
 0x379   : > { %v1107_v35 = vmul.f32 %v1459_v17, %v1106_v23  ;;  %vm1153_vm1 = vcmp.eq.f32.partialorder %v1152_v49, 8.507059e+37 }
 0x37a   : > { %v1126_v33 = vmul.f32 %v1461_v19, %v1125_v24 }
 0x37b   : > { %v1463_v46 = vpop.eup %1462  ;;  %v1108_v48 = vadd.f32 %v1459_v17, %v1107_v35 }
 0x37c   : > { %v1127_v34 = vadd.f32 %v1461_v19, %v1126_v33  ;;  %v1144_v36 = vmul.f32 %v1463_v46, %v1142_v16  ;;  %v1465_v40 = vpop.eup %1464  ;;  %vm1149_vm14 = vweird.f32 %v1463_v46 }
 0x37d   : > { %v1112_v38 = vsel %vm1111_vm10, %v1459_v17, %v1108_v48  ;;  %vm1150_vm0 = vmor %vm1148_vm15, %vm1149_vm14 }
 0x37e   : > { %v1117_v29 = vsel %vm1114_vm12, %v1116_v44, %v1112_v38  ;;  %v1131_v28 = vsel %vm1130_vm11, %v1461_v19, %v1127_v34  ;;  %v1145_v47 = vsub.f32 1.0, %v1144_v36 }
 0x37f   : > { %v1136_v41 = vsel %vm1133_vm13, %v1135_v30, %v1131_v28  ;;  %v1159_v42 = vmul.f32 %v1465_v40, %v1117_v29 }
 0x380   : > { %v1158_v22 = vmul.f32 %v1136_v41, %v2109_v53  ;;  %v1146_v37 = vmul.f32 %v1463_v46, %v1145_v47 }
 0x382   : > { %v1160_v45 = vadd.f32 %v1159_v42, %v1158_v22  ;;  %v1147_v39 = vadd.f32 %v1463_v46, %v1146_v37 }
 0x384   : > { %1466 = vtanh.f32 %v1160_v45  ;;  %1164 = vst [vmem:[#allocation4] sm:$0xff] %v1160_v45  ;;  %v1151_v50 = vsel %vm1150_vm0, %v1463_v46, %v1147_v39 }
 0x385   : > { %v1156_v54 = vsel %vm1153_vm1, %v1155_v51, %v1151_v50 }
 0x389   : > { %1168 = sbr.rel (%p1342_p9) target bundleno = 1071 (0x42f), region = 60 }
 0x38a   : > { %v1467_v52 = vpop.eup %1466 }
 0x38b   : > { %v1162_v55 = vmul.f32 %v1467_v52, %v1156_v54 }
 0x38d   : > { %1163 = vst [vmem:[#allocation3] sm:$0xff] %v1162_v55 }
 0x38e   : > { %v1184_v53 = vld [vmem:[#allocation8 + $0x78] sm:$0xff]  ;;  %v1183_v56 = vld [vmem:[#allocation8 + $0x70] sm:$0xff]  ;;  %v1182_v57 = vld [vmem:[#allocation8 + $0x68] sm:$0xff] }
 0x38f   : > { %1189 = vmatpush.msra.mxu0 %v1184_v53  ;;  %v1181_v58 = vld [vmem:[#allocation8 + $0x60] sm:$0xff]  ;;  %v1180_v59 = vld [vmem:[#allocation8 + $0x58] sm:$0xff]  ;;  %v1179_v61 = vld [vmem:[#allocation8 + $0x50] sm:$0xff] }
 0x390   : > { %v1178_v62 = vld [vmem:[#allocation8 + $0x48] sm:$0xff]  ;;  %v1177_v60 = vld [vmem:[#allocation8 + $0x40] sm:$0xff]  ;;  %v1176_v63 = vld [vmem:[#allocation8 + $0x38] sm:$0xff] }
 0x391   : > { %1190 = vmatpush.msra.mxu0 %v1183_v56  ;;  %v1175_v0 = vld [vmem:[#allocation8 + $0x30] sm:$0xff]  ;;  %v1174_v1 = vld [vmem:[#allocation8 + $0x28] sm:$0xff]  ;;  %v1173_v2 = vld [vmem:[#allocation8 + $0x20] sm:$0xff] }
 0x392   : > { %v1172_v3 = vld [vmem:[#allocation8 + $0x18] sm:$0xff]  ;;  %v1171_v4 = vld [vmem:[#allocation8 + $0x10] sm:$0xff]  ;;  %v1170_v26 = vld [vmem:[#allocation8 + $0x8] sm:$0xff] }
 0x393   : > { %1191 = vmatpush.msra.mxu0 %v1182_v57  ;;  %v1169_v5 = vld [vmem:[#allocation8] sm:$0xff]  ;;  %v1468_v6 = vld [vmem:[%s2136_s5] ss:$0 sm:$0xff] }
 0x395   : > { %1192 = vmatpush.msra.mxu0 %v1181_v58 }
 0x397   : > { %1193 = vmatpush.msra.mxu0 %v1180_v59 }
 0x399   : > { %1194 = vmatpush.msra.mxu0 %v1179_v61 }
 0x39b   : > { %1195 = vmatpush.msra.mxu0 %v1178_v62 }
 0x39d   : > { %1196 = vmatpush.msra.mxu0 %v1177_v60 }
 0x39f   : > { %1197 = vmatpush.msra.mxu0 %v1176_v63 }
 0x3a1   : > { %1198 = vmatpush.msra.mxu0 %v1175_v0 }
 0x3a3   : > { %1199 = vmatpush.msra.mxu0 %v1174_v1 }
 0x3a5   : > { %1200 = vmatpush.msra.mxu0 %v1173_v2 }
 0x3a7   : > { %1201 = vmatpush.msra.mxu0 %v1172_v3 }
 0x3a9   : > { %1202 = vmatpush.msra.mxu0 %v1171_v4 }
 0x3ab   : > { %1203 = vmatpush.msra.mxu0 %v1170_v26 }
 0x3ad   : > { %1204 = vmatpush.msra.mxu0 %v1169_v5 }
 0x3ae   : > { %1205 = vmatmul.f32.vlgmr.msra.gmra.mxu0 %v1162_v55 }
 0x42b   : > { %v1206_v7 = vpop.f32.mrf.mxu0 }
 0x42c   : > { %v1207_v8 = vadd.f32 %v1468_v6, %v1206_v7 }
 0x42e   : > { %1209 = vst [vmem:[#allocation10] sm:$0xff] %v1207_v8 }
 0x42f PF: > { %p1370_p10 = scmp.eq.s32.totalorder %s1299_s24, 1  ;;  %s1220_s13 = sshll.u32 %s2137_s6, 4  ;;  %s1221_s13 = int_to_ptr.hbm [resolvable:$true] %s1220_s13 }
 0x430   : > { %s1600_s14 = smov [#allocation10]  }
 0x431   : > { %s1218_s15 = sshll.u32 %s1600_s14, 4  ;;  %s1219_s15 = int_to_ptr.vmem [resolvable:$true] %s1218_s15 }
 0x432   : > { %1356 = dma.vmem_to_hbm [thread:$0]  (%p1370_p10), %s1219_s15, 128, %s1221_s13, [#allocation7]  }
 0x433   : > { %1578 = dma.done.wait (%p1370_p10), [#allocation7], 128  }
 0x434   : > { %1580 = vsyncadd (%p1370_p10), [#allocation7], 4294967168 }
 0x435 PF: > { %s19_s23 = sadd.s32 1, %s1591_s23   ;;  %s2222_s21 = smov %s1587_s22 }
 0x436   : > { %p16_p11 = scmp.ge.s32.totalorder %s19_s23, 4   ;;  %s2223_s22 = smov %s2225_s25 }
 0x438   :  { %18 = sbr.rel (!%p16_p11) target bundleno = 4 (0x4), region = 93 }
 0x43d   :  { %1234 = vsyncpa [#allocation6], 1 }
 0x43e   :  { %1236 = vsyncpa [#allocation6 + $0x1], 1 }
 0x43f   :  { %1237 = vsyncpa [#allocation9], 1 }
 0x440   :  { %1238 = vsyncpa [#allocation7], 1 }
 0x441   :  { %1240 = vsyncpa [#allocation7 + $0x1], 1 }

</bundles_post_ra>
